<compile_context>
chip_gen: v5e
topology: v5e:2x2
jax: 0.10.0
libtpu: 0.0.40
codegen_flags: <defaults>
</compile_context>

<pallas_src>
import jax
import jax.numpy as jnp
from jax.experimental import pallas as pl
from jax.experimental.pallas import tpu as pltpu

INPUT_SIZE = 784
HIDDEN = 50
NUM_CLASSES = 10
HIDDEN_PAD = 128   # hidden dim padded to lane width
OUT_PAD = 128      # output dim padded to lane width


def mlp_kernel(x_ref, w1_ref, b1_ref, w2_ref, b2_ref, o_ref):
    # Cast activations to bf16 in-kernel (no-op if the caller already passes
    # bf16) — avoids a separate wrapper-side cast pass over HBM.
    x = x_ref[...].astype(jnp.bfloat16)
    # fc1: (TILE_B, 784) bf16 @ (784, 128) bf16 -> f32 accumulate
    h = jnp.dot(x, w1_ref[...], preferred_element_type=jnp.float32)
    # bias + ReLU in f32 (padded hidden lanes stay exactly 0: 0 + 0 -> relu 0)
    h = jnp.maximum(h + b1_ref[...], 0.0)
    # fc2: bf16 activations, f32 accumulate
    out = jnp.dot(h.astype(jnp.bfloat16), w2_ref[...],
                  preferred_element_type=jnp.float32)
    # bf16, lane-dense (128-wide) unmasked store
    o_ref[...] = (out + b2_ref[...]).astype(o_ref.dtype)


def _round_up(n, m):
    return ((n + m - 1) // m) * m


def nn_forward_padded(x, w1p, b1p, w2p, b2p, *, tile_b=2048):
    """Raw kernel output: (b_pad, 128) bf16 (rows >= B and lanes >= 10 are padding).

    x:   (B, 784) float32 or bfloat16
    w1p: (784, 128) bf16   zero-padded fc1 weight (transposed)
    b1p: (1, 128)   f32    zero-padded fc1 bias
    w2p: (128, 128) bf16   zero-padded fc2 weight (transposed)
    b2p: (1, 128)   f32    zero-padded fc2 bias
    """
    B = x.shape[0]

    # Clamp tile_b for small batches (don't DMA/compute 128x more rows than exist).
    tile_b = max(256, min(tile_b, _round_up(B, 256)))
    # For large batches make sure there are >= 2 grid steps so the "parallel"
    # batch axis can actually be sharded across both v7x TensorCores.
    if B >= 512 and pl.cdiv(B, tile_b) < 2:
        tile_b = _round_up(pl.cdiv(B, 2), 256)

    grid_b = pl.cdiv(B, tile_b)
    b_pad = grid_b * tile_b
    if b_pad != B:
        x = jnp.pad(x, ((0, b_pad - B), (0, 0)))

    # Working-set estimate (double-buffered x and out tiles + resident params);
    # keep a little headroom and stay within v7x's 64 MiB per-TC VMEM.
    itemsize = jnp.dtype(x.dtype).itemsize
    vmem_needed = (2 * tile_b * INPUT_SIZE * itemsize       # x tiles (dbl-buffered)
                   + 2 * tile_b * OUT_PAD * 2               # out tiles (bf16)
                   + INPUT_SIZE * HIDDEN_PAD * 2            # w1 (bf16)
                   + HIDDEN_PAD * OUT_PAD * 2               # w2 (bf16)
                   + 2 * OUT_PAD * 4)                       # biases (f32)
    vmem_limit = min(max(vmem_needed + (8 << 20), 32 << 20), 64 << 20)

    out_padded = pl.pallas_call(
        mlp_kernel,
        out_shape=jax.ShapeDtypeStruct((b_pad, OUT_PAD), jnp.bfloat16),
        grid_spec=pltpu.PrefetchScalarGridSpec(
            num_scalar_prefetch=0,
            grid=(grid_b,),
            in_specs=[
                pl.BlockSpec((tile_b, INPUT_SIZE), lambda i: (i, 0)),      # x: streamed
                pl.BlockSpec((INPUT_SIZE, HIDDEN_PAD), lambda i: (0, 0)),  # w1: resident
                pl.BlockSpec((1, HIDDEN_PAD), lambda i: (0, 0)),           # b1: resident
                pl.BlockSpec((HIDDEN_PAD, OUT_PAD), lambda i: (0, 0)),     # w2: resident
                pl.BlockSpec((1, OUT_PAD), lambda i: (0, 0)),              # b2: resident
            ],
            out_specs=pl.BlockSpec((tile_b, OUT_PAD), lambda i: (i, 0)),
        ),
        compiler_params=pltpu.CompilerParams(
            dimension_semantics=("parallel",),
            vmem_limit_bytes=vmem_limit,
        ),
    )(x, w1p, b1p, w2p, b2p)

    return out_padded


def nn_forward(x, w1p, b1p, w2p, b2p, *, tile_b=2048):
    """PyTorch-equivalent forward: returns (B, 10) logits (bf16).

    Prefer nn_forward_padded + slicing at the point of use (e.g. inside a fused
    argmax/softmax) to avoid materializing the compacted copy.
    """
    B = x.shape[0]
    out_padded = nn_forward_padded(x, w1p, b1p, w2p, b2p, tile_b=tile_b)
    return out_padded[:B, :NUM_CLASSES]


def init_params(key):
    """Deterministic init mimicking PyTorch nn.Linear default (uniform +/- 1/sqrt(fan_in)).

    Returns unpadded f32 params in (in, out) layout.
    """
    k1, k2, k3, k4 = jax.random.split(key, 4)
    bound1 = 1.0 / jnp.sqrt(jnp.float32(INPUT_SIZE))
    bound2 = 1.0 / jnp.sqrt(jnp.float32(HIDDEN))
    w1 = jax.random.uniform(k1, (INPUT_SIZE, HIDDEN), jnp.float32, -bound1, bound1)
    b1 = jax.random.uniform(k2, (1, HIDDEN), jnp.float32, -bound1, bound1)
    w2 = jax.random.uniform(k3, (HIDDEN, NUM_CLASSES), jnp.float32, -bound2, bound2)
    b2 = jax.random.uniform(k4, (1, NUM_CLASSES), jnp.float32, -bound2, bound2)
    return w1, b1, w2, b2


def prepare_params(w1, b1, w2, b2):
    """Zero-pad feature dims to 128 lanes; weights bf16, biases f32."""
    w1p = jnp.zeros((INPUT_SIZE, HIDDEN_PAD), jnp.bfloat16)
    w1p = w1p.at[:, :HIDDEN].set(w1.astype(jnp.bfloat16))
    b1p = jnp.zeros((1, HIDDEN_PAD), jnp.float32)
    b1p = b1p.at[:, :HIDDEN].set(b1.reshape(1, HIDDEN))
    w2p = jnp.zeros((HIDDEN_PAD, OUT_PAD), jnp.bfloat16)
    w2p = w2p.at[:HIDDEN, :NUM_CLASSES].set(w2.astype(jnp.bfloat16))
    b2p = jnp.zeros((1, OUT_PAD), jnp.float32)
    b2p = b2p.at[:, :NUM_CLASSES].set(b2.reshape(1, NUM_CLASSES))
    return w1p, b1p, w2p, b2p


if __name__ == "__main__":
    key = jax.random.PRNGKey(0)
    k_x, k_p = jax.random.split(key)
    batch = 8
    x = jax.random.normal(k_x, (batch, INPUT_SIZE), dtype=jnp.float32)

    w1, b1, w2, b2 = init_params(k_p)
    w1p, b1p, w2p, b2p = prepare_params(w1, b1, w2, b2)

    out = nn_forward(x, w1p, b1p, w2p, b2p)
    out = jax.block_until_ready(out)
    assert out.shape == (batch, NUM_CLASSES)
    out_f32 = out.astype(jnp.float32)

    # Reference using the same bf16 rounding (inputs/weights/activations/output),
    # f32 accumulation.
    xb = x.astype(jnp.bfloat16).astype(jnp.float32)
    w1f = w1.astype(jnp.bfloat16).astype(jnp.float32)
    w2f = w2.astype(jnp.bfloat16).astype(jnp.float32)
    h_ref = jnp.maximum(xb @ w1f + b1, 0.0)
    ref = h_ref.astype(jnp.bfloat16).astype(jnp.float32) @ w2f + b2
    ref = ref.astype(jnp.bfloat16).astype(jnp.float32)
    assert jnp.allclose(out_f32, ref, atol=2e-2, rtol=2e-2)

    # Loose sanity check against the full-f32 reference as well.
    ref_f32 = jnp.maximum(x @ w1 + b1, 0.0) @ w2 + b2
    assert jnp.allclose(out_f32, ref_f32, atol=5e-2, rtol=5e-2)

    print("KERNEL_OK")
</pallas_src>

<mosaic_0001>
module attributes {stable_mosaic.version = 11 : i64} {
  func.func @mlp_kernel(%arg0: i32, %arg1: memref<256x784xf32, #tpu.memory_space<vmem>>, %arg2: memref<784x128xbf16, #tpu.memory_space<vmem>>, %arg3: memref<1x128xf32, #tpu.memory_space<vmem>>, %arg4: memref<128x128xbf16, #tpu.memory_space<vmem>>, %arg5: memref<1x128xf32, #tpu.memory_space<vmem>>, %arg6: memref<256x128xbf16, #tpu.memory_space<vmem>>) attributes {dimension_semantics = [#tpu.dimension_semantics<parallel>], iteration_bounds = array<i64: 1>, scalar_prefetch = 0 : i64, scratch_operands = 0 : i64, tpu.core_type = #tpu.core_type<tc>, window_params = [{transform_indices = @transform_0, window_bounds = array<i64: 256, 784>}, {pipeline_mode = #tpu.pipeline_mode<synchronous>, transform_indices = @transform_1, window_bounds = array<i64: 784, 128>}, {pipeline_mode = #tpu.pipeline_mode<synchronous>, transform_indices = @transform_2, window_bounds = array<i64: 1, 128>}, {pipeline_mode = #tpu.pipeline_mode<synchronous>, transform_indices = @transform_3, window_bounds = array<i64: 128, 128>}, {pipeline_mode = #tpu.pipeline_mode<synchronous>, transform_indices = @transform_4, window_bounds = array<i64: 1, 128>}, {transform_indices = @transform_5, window_bounds = array<i64: 256, 128>}]} {
    %c0 = arith.constant 0 : index
    %c0_0 = arith.constant 0 : index
    %0 = vector.load %arg1[%c0, %c0_0] : memref<256x784xf32, #tpu.memory_space<vmem>>, vector<256x784xf32>
    %1 = arith.truncf %0 : vector<256x784xf32> to vector<256x784xbf16>
    %c0_1 = arith.constant 0 : index
    %c0_2 = arith.constant 0 : index
    %2 = vector.load %arg2[%c0_1, %c0_2] : memref<784x128xbf16, #tpu.memory_space<vmem>>, vector<784x128xbf16>
    %cst = arith.constant dense<0.000000e+00> : vector<256x128xf32>
    %3 = tpu.matmul %1, %2, %cst {dimension_numbers = #tpu.dot_dimension_numbers<[1], [0], [0], [1], [0, 0, 1, 1], [], []>} : vector<256x784xbf16>, vector<784x128xbf16>, vector<256x128xf32> -> vector<256x128xf32>
    %c0_3 = arith.constant 0 : index
    %c0_4 = arith.constant 0 : index
    %4 = vector.load %arg3[%c0_3, %c0_4] : memref<1x128xf32, #tpu.memory_space<vmem>>, vector<1x128xf32>
    %5 = vector.broadcast %4 : vector<1x128xf32> to vector<256x128xf32>
    %6 = arith.addf %3, %5 : vector<256x128xf32>
    %cst_5 = arith.constant 0.000000e+00 : f32
    %7 = vector.broadcast %cst_5 : f32 to vector<256x128xf32>
    %8 = arith.maximumf %6, %7 : vector<256x128xf32>
    %9 = arith.truncf %8 : vector<256x128xf32> to vector<256x128xbf16>
    %c0_6 = arith.constant 0 : index
    %c0_7 = arith.constant 0 : index
    %10 = vector.load %arg4[%c0_6, %c0_7] : memref<128x128xbf16, #tpu.memory_space<vmem>>, vector<128x128xbf16>
    %cst_8 = arith.constant dense<0.000000e+00> : vector<256x128xf32>
    %11 = tpu.matmul %9, %10, %cst_8 {dimension_numbers = #tpu.dot_dimension_numbers<[1], [0], [0], [1], [0, 0, 1, 1], [], []>} : vector<256x128xbf16>, vector<128x128xbf16>, vector<256x128xf32> -> vector<256x128xf32>
    %c0_9 = arith.constant 0 : index
    %c0_10 = arith.constant 0 : index
    %12 = vector.load %arg5[%c0_9, %c0_10] : memref<1x128xf32, #tpu.memory_space<vmem>>, vector<1x128xf32>
    %13 = vector.broadcast %12 : vector<1x128xf32> to vector<256x128xf32>
    %14 = arith.addf %11, %13 : vector<256x128xf32>
    %15 = arith.truncf %14 : vector<256x128xf32> to vector<256x128xbf16>
    %c0_11 = arith.constant 0 : index
    %c0_12 = arith.constant 0 : index
    %16 = vector.load %arg6[%c0_11, %c0_12] : memref<256x128xbf16, #tpu.memory_space<vmem>>, vector<256x128xbf16>
    tpu.vector_store %arg6[%c0_11, %c0_12], %15 {strides = array<i32>} : memref<256x128xbf16, #tpu.memory_space<vmem>>, vector<256x128xbf16>,
    return
  }
  func.func @transform_0(%arg0: i32) -> (i32, i32) {
    %c0_i32 = arith.constant 0 : i32
    %c0_i32_0 = arith.constant 0 : i32
    return %arg0, %c0_i32 : i32, i32
  }
  func.func @transform_1(%arg0: i32) -> (i32, i32) {
    %c0_i32 = arith.constant 0 : i32
    %c0_i32_0 = arith.constant 0 : i32
    %c0_i32_1 = arith.constant 0 : i32
    return %c0_i32, %c0_i32_0 : i32, i32
  }
  func.func @transform_2(%arg0: i32) -> (i32, i32) {
    %c0_i32 = arith.constant 0 : i32
    %c0_i32_0 = arith.constant 0 : i32
    %c0_i32_1 = arith.constant 0 : i32
    return %c0_i32, %c0_i32_0 : i32, i32
  }
  func.func @transform_3(%arg0: i32) -> (i32, i32) {
    %c0_i32 = arith.constant 0 : i32
    %c0_i32_0 = arith.constant 0 : i32
    %c0_i32_1 = arith.constant 0 : i32
    return %c0_i32, %c0_i32_0 : i32, i32
  }
  func.func @transform_4(%arg0: i32) -> (i32, i32) {
    %c0_i32 = arith.constant 0 : i32
    %c0_i32_0 = arith.constant 0 : i32
    %c0_i32_1 = arith.constant 0 : i32
    return %c0_i32, %c0_i32_0 : i32, i32
  }
  func.func @transform_5(%arg0: i32) -> (i32, i32) {
    %c0_i32 = arith.constant 0 : i32
    %c0_i32_0 = arith.constant 0 : i32
    return %arg0, %c0_i32 : i32, i32
  }
}

</mosaic_0001>

<bundles_post_ra>
// kernel: tpu_custom_call.1
= control target key start
LH: loop header
LB: loop body
LE: loop exit
PB: predicated region body
PF: predicated region fallthrough
CT: control target
= control target key end

     0   :  { %s3241_s0 = inlined_call_operand.vmem [shape: f32[256,784], index: 0, kind: input, shape index: {}]   ;;  %s3242_s1 = inlined_call_operand.vmem [shape: bf16[784,128], index: 1, kind: input, shape index: {}]   ;;  %s3243_s2 = inlined_call_operand.vmem [shape: f32[1,128], index: 2, kind: input, shape index: {}]   ;;  %s3244_s3 = inlined_call_operand.vmem [shape: bf16[128,128], index: 3, kind: input, shape index: {}]   ;;  %s3245_s4 = inlined_call_operand.vmem [shape: f32[1,128], index: 4, kind: input, shape index: {}]   ;;  %s3246_s5 = inlined_call_operand.hbm [shape: bf16[256,128], index: 5, kind: output, shape index: {}]  }
   0x1   :  { %v1964_v0 = vld [vmem:[%s3242_s1 + $0x38] sm:$0xff]  ;;  %v1963_v4 = vld [vmem:[%s3242_s1 + $0x30] sm:$0xff]  ;;  %v1962_v8 = vld [vmem:[%s3242_s1 + $0x28] sm:$0xff] }
   0x2   :  { %v1972_v1 = vld [vmem:[%s3242_s1 + $0x78] sm:$0xff]  ;;  %803 = vmatpush.bf16.msra.mxu0 %v1964_v0  ;;  %v1971_v5 = vld [vmem:[%s3242_s1 + $0x70] sm:$0xff]  ;;  %v1970_v9 = vld [vmem:[%s3242_s1 + $0x68] sm:$0xff] }
   0x3   :  { %v1980_v2 = vld [vmem:[%s3242_s1 + $0xb8] sm:$0xff]  ;;  %892 = vmatpush.bf16.msra.mxu1 %v1972_v1  ;;  %v1979_v6 = vld [vmem:[%s3242_s1 + $0xb0] sm:$0xff]  ;;  %v1978_v10 = vld [vmem:[%s3242_s1 + $0xa8] sm:$0xff] }
   0x4   :  { %v1988_v3 = vld [vmem:[%s3242_s1 + $0xf8] sm:$0xff]  ;;  %981 = vmatpush.bf16.msra.mxu2 %v1980_v2  ;;  %v1987_v7 = vld [vmem:[%s3242_s1 + $0xf0] sm:$0xff]  ;;  %v1986_v11 = vld [vmem:[%s3242_s1 + $0xe8] sm:$0xff] }
   0x5   :  { %1070 = vmatpush.bf16.msra.mxu3 %v1988_v3  ;;  %v1961_v12 = vld [vmem:[%s3242_s1 + $0x20] sm:$0xff]  ;;  %v1960_v16 = vld [vmem:[%s3242_s1 + $0x18] sm:$0xff] }
   0x6   :  { %804 = vmatpush.bf16.msra.mxu0 %v1963_v4  ;;  %v1969_v13 = vld [vmem:[%s3242_s1 + $0x60] sm:$0xff]  ;;  %v1968_v17 = vld [vmem:[%s3242_s1 + $0x58] sm:$0xff] }
   0x7   :  { %893 = vmatpush.bf16.msra.mxu1 %v1971_v5  ;;  %v1977_v14 = vld [vmem:[%s3242_s1 + $0xa0] sm:$0xff]  ;;  %v1976_v18 = vld [vmem:[%s3242_s1 + $0x98] sm:$0xff] }
   0x8   :  { %982 = vmatpush.bf16.msra.mxu2 %v1979_v6  ;;  %v1985_v15 = vld [vmem:[%s3242_s1 + $0xe0] sm:$0xff]  ;;  %v1984_v19 = vld [vmem:[%s3242_s1 + $0xd8] sm:$0xff] }
   0x9   :  { %1071 = vmatpush.bf16.msra.mxu3 %v1987_v7 }
   0xa   :  { %805 = vmatpush.bf16.msra.mxu0 %v1962_v8 }
   0xb   :  { %894 = vmatpush.bf16.msra.mxu1 %v1970_v9 }
   0xc   :  { %983 = vmatpush.bf16.msra.mxu2 %v1978_v10 }
   0xd   :  { %1072 = vmatpush.bf16.msra.mxu3 %v1986_v11 }
   0xe   :  { %806 = vmatpush.bf16.msra.mxu0 %v1961_v12 }
   0xf   :  { %895 = vmatpush.bf16.msra.mxu1 %v1969_v13 }
  0x10   :  { %984 = vmatpush.bf16.msra.mxu2 %v1977_v14 }
  0x11   :  { %1073 = vmatpush.bf16.msra.mxu3 %v1985_v15 }
  0x12   :  { %10 = vsyncpa [#allocation3], 0  ;;  %807 = vmatpush.bf16.msra.mxu0 %v1960_v16  ;;  %v1959_v20 = vld [vmem:[%s3242_s1 + $0x10] sm:$0xff]  ;;  %v1958_v24 = vld [vmem:[%s3242_s1 + $0x8] sm:$0xff]  ;;  %vm754_vm0 = vcmask 130048   ;;  %s1701_s9 = sshll.u32 %s3246_s5, 4  ;;  %s1702_s9 = int_to_ptr.hbm [resolvable:$true] %s1701_s9 }
  0x13   :  { %896 = vmatpush.bf16.msra.mxu1 %v1968_v17  ;;  %v1967_v21 = vld [vmem:[%s3242_s1 + $0x50] sm:$0xff]  ;;  %v1966_v25 = vld [vmem:[%s3242_s1 + $0x48] sm:$0xff]  ;;  %v1957_v28 = vld [vmem:[%s3242_s1] sm:$0xff]  ;;  %s2142_s10 = smov 4  }
  0x14   :  { %985 = vmatpush.bf16.msra.mxu2 %v1976_v18  ;;  %v1975_v22 = vld [vmem:[%s3242_s1 + $0x90] sm:$0xff]  ;;  %v1974_v26 = vld [vmem:[%s3242_s1 + $0x88] sm:$0xff]  ;;  %v1965_v29 = vld [vmem:[%s3242_s1 + $0x40] sm:$0xff] }
  0x15   :  { %1074 = vmatpush.bf16.msra.mxu3 %v1984_v19  ;;  %v1983_v23 = vld [vmem:[%s3242_s1 + $0xd0] sm:$0xff]  ;;  %v1982_v27 = vld [vmem:[%s3242_s1 + $0xc8] sm:$0xff]  ;;  %v1973_v30 = vld [vmem:[%s3242_s1 + $0x80] sm:$0xff] }
  0x16   :  { %808 = vmatpush.bf16.msra.mxu0 %v1959_v20  ;;  %v1981_v31 = vld [vmem:[%s3242_s1 + $0xc0] sm:$0xff]  ;;  %v29_v33 = vld [vmem:[%s3241_s0 + $0x38] sm:$0xff]  ;;  %v23_v34 = vld [vmem:[%s3241_s0 + $0x8] sm:$0xff] }
  0x17   :  { %897 = vmatpush.bf16.msra.mxu1 %v1967_v21  ;;  %v22_v32 = vld [vmem:[%s3241_s0] sm:$0xff]  ;;  %v24_v36 = vld [vmem:[%s3241_s0 + $0x10] sm:$0xff]  ;;  %v31_v37 = vld [vmem:[%s3241_s0 + $0x48] sm:$0xff] }
  0x18   :  { %986 = vmatpush.bf16.msra.mxu2 %v1975_v22  ;;  %v30_v35 = vld [vmem:[%s3241_s0 + $0x40] sm:$0xff]  ;;  %v25_v38 = vld [vmem:[%s3241_s0 + $0x18] sm:$0xff]  ;;  %v32_v39 = vld [vmem:[%s3241_s0 + $0x50] sm:$0xff]  ;;  %v246_v42 = vpack.c.bf16 %v29_v33, %v22_v32  ;;  %v248_v44 = vpack.c.bf16 %v31_v37, %v24_v36 }
  0x19   :  { %1075 = vmatpush.bf16.msra.mxu3 %v1983_v23  ;;  %v2005_v40 = vld [vmem:[%s3242_s1 + $0x180] sm:$0xff]  ;;  %v1996_v41 = vld [vmem:[%s3242_s1 + $0x138] sm:$0xff]  ;;  %v247_v43 = vpack.c.bf16 %v30_v35, %v23_v34  ;;  %v249_v45 = vpack.c.bf16 %v32_v39, %v25_v38  ;;  %v1995_v47 = vld [vmem:[%s3242_s1 + $0x130] sm:$0xff] }
  0x1a   :  { %809 = vmatpush.bf16.msra.mxu0 %v1958_v24  ;;  %v2004_v46 = vld [vmem:[%s3242_s1 + $0x178] sm:$0xff]  ;;  %v2003_v48 = vld [vmem:[%s3242_s1 + $0x170] sm:$0xff]  ;;  %v43_v50 = vld [vmem:[%s3241_s0 + $0xa8] sm:$0xff] }
  0x1b   :  { %898 = vmatpush.bf16.msra.mxu1 %v1966_v25  ;;  %v36_v49 = vld [vmem:[%s3241_s0 + $0x70] sm:$0xff]  ;;  %v37_v51 = vld [vmem:[%s3241_s0 + $0x78] sm:$0xff]  ;;  %v38_v53 = vld [vmem:[%s3241_s0 + $0x80] sm:$0xff] }
  0x1c   :  { %987 = vmatpush.bf16.msra.mxu2 %v1974_v26  ;;  %v44_v52 = vld [vmem:[%s3241_s0 + $0xb0] sm:$0xff]  ;;  %v45_v54 = vld [vmem:[%s3241_s0 + $0xb8] sm:$0xff]  ;;  %v39_v55 = vld [vmem:[%s3241_s0 + $0x88] sm:$0xff]  ;;  %v253_v57 = vpack.c.bf16 %v43_v50, %v36_v49 }
  0x1d   :  { %1076 = vmatpush.bf16.msra.mxu3 %v1982_v27  ;;  %v46_v56 = vld [vmem:[%s3241_s0 + $0xc0] sm:$0xff]  ;;  %v254_v58 = vpack.c.bf16 %v44_v52, %v37_v51  ;;  %v255_v59 = vpack.c.bf16 %v45_v54, %v38_v53  ;;  %v57_v62 = vld [vmem:[%s3241_s0 + $0x118] sm:$0xff]  ;;  %v51_v63 = vld [vmem:[%s3241_s0 + $0xe8] sm:$0xff] }
  0x1e   :  { %810 = vmatpush.bf16.msra.mxu0 %v1957_v28  ;;  %v256_v60 = vpack.c.bf16 %v46_v56, %v39_v55  ;;  %v50_v61 = vld [vmem:[%s3241_s0 + $0xe0] sm:$0xff]  ;;  %v52_v1 = vld [vmem:[%s3241_s0 + $0xf0] sm:$0xff]  ;;  %v59_v2 = vld [vmem:[%s3241_s0 + $0x128] sm:$0xff] }
  0x1f   :  { %899 = vmatpush.bf16.msra.mxu1 %v1965_v29  ;;  %v58_v0 = vld [vmem:[%s3241_s0 + $0x120] sm:$0xff]  ;;  %v53_v3 = vld [vmem:[%s3241_s0 + $0xf8] sm:$0xff]  ;;  %v60_v4 = vld [vmem:[%s3241_s0 + $0x130] sm:$0xff]  ;;  %v260_v5 = vpack.c.bf16 %v57_v62, %v50_v61  ;;  %v262_v7 = vpack.c.bf16 %v59_v2, %v52_v1 }
  0x20   :  { %988 = vmatpush.bf16.msra.mxu2 %v1973_v30  ;;  %v261_v6 = vpack.c.bf16 %v58_v0, %v51_v63  ;;  %v263_v8 = vpack.c.bf16 %v60_v4, %v53_v3  ;;  %v1994_v9 = vld [vmem:[%s3242_s1 + $0x128] sm:$0xff]  ;;  %v64_v11 = vld [vmem:[%s3241_s0 + $0x150] sm:$0xff]  ;;  %v65_v13 = vld [vmem:[%s3241_s0 + $0x158] sm:$0xff] }
  0x21   :  { %1077 = vmatpush.bf16.msra.mxu3 %v1981_v31  ;;  %811 = vmatmul.bf16.vlgmr.msra.gmra.mxu0 %v246_v42  ;;  %v2002_v10 = vld [vmem:[%s3242_s1 + $0x168] sm:$0xff]  ;;  %v72_v14 = vld [vmem:[%s3241_s0 + $0x190] sm:$0xff]  ;;  %v66_v15 = vld [vmem:[%s3241_s0 + $0x160] sm:$0xff] }
  0x22   :  { %1159 = vmatpush.bf16.msrb.mxu0 %v1996_v41  ;;  %900 = vmatmul.bf16.vlgmr.msra.gmra.mxu1 %v247_v43  ;;  %v71_v12 = vld [vmem:[%s3241_s0 + $0x188] sm:$0xff]  ;;  %v73_v16 = vld [vmem:[%s3241_s0 + $0x198] sm:$0xff]  ;;  %v74_v18 = vld [vmem:[%s3241_s0 + $0x1a0] sm:$0xff]  ;;  %v268_v20 = vpack.c.bf16 %v72_v14, %v65_v13 }
  0x23   :  { %989 = vmatmul.bf16.vlgmr.msra.gmra.mxu2 %v248_v44  ;;  %1248 = vmatpush.bf16.msrb.mxu1 %v2004_v46  ;;  %v67_v17 = vld [vmem:[%s3241_s0 + $0x168] sm:$0xff]  ;;  %v267_v19 = vpack.c.bf16 %v71_v12, %v64_v11  ;;  %v269_v21 = vpack.c.bf16 %v73_v16, %v66_v15  ;;  %v78_v23 = vld [vmem:[%s3241_s0 + $0x1c0] sm:$0xff]  ;;  %v85_v24 = vld [vmem:[%s3241_s0 + $0x1f8] sm:$0xff] }
  0x24   :  { %1344 = vmatpush.bf16.msrb.mxu2 %v2005_v40  ;;  %1078 = vmatmul.bf16.vlgmr.msra.gmra.mxu3 %v249_v45  ;;  %v270_v22 = vpack.c.bf16 %v74_v18, %v67_v17  ;;  %v79_v25 = vld [vmem:[%s3241_s0 + $0x1c8] sm:$0xff]  ;;  %v86_v26 = vld [vmem:[%s3241_s0 + $0x200] sm:$0xff]  ;;  %v80_v27 = vld [vmem:[%s3241_s0 + $0x1d0] sm:$0xff]  ;;  %v274_v31 = vpack.c.bf16 %v85_v24, %v78_v23 }
  0x25   :  { %v87_v28 = vld [vmem:[%s3241_s0 + $0x208] sm:$0xff]  ;;  %v81_v29 = vld [vmem:[%s3241_s0 + $0x1d8] sm:$0xff]  ;;  %v88_v30 = vld [vmem:[%s3241_s0 + $0x210] sm:$0xff]  ;;  %v275_v32 = vpack.c.bf16 %v86_v26, %v79_v25 }
  0x26   :  { %1160 = vmatpush.bf16.msrb.mxu0 %v1995_v47  ;;  %v276_v33 = vpack.c.bf16 %v87_v28, %v80_v27  ;;  %v277_v34 = vpack.c.bf16 %v88_v30, %v81_v29  ;;  %v1993_v35 = vld [vmem:[%s3242_s1 + $0x120] sm:$0xff]  ;;  %v92_v37 = vld [vmem:[%s3241_s0 + $0x230] sm:$0xff]  ;;  %v99_v38 = vld [vmem:[%s3241_s0 + $0x268] sm:$0xff] }
  0x27   :  { %1249 = vmatpush.bf16.msrb.mxu1 %v2003_v48  ;;  %v2001_v36 = vld [vmem:[%s3242_s1 + $0x160] sm:$0xff]  ;;  %v93_v39 = vld [vmem:[%s3241_s0 + $0x238] sm:$0xff]  ;;  %v100_v40 = vld [vmem:[%s3241_s0 + $0x270] sm:$0xff]  ;;  %v281_v45 = vpack.c.bf16 %v99_v38, %v92_v37 }
  0x28   :  { %v94_v41 = vld [vmem:[%s3241_s0 + $0x240] sm:$0xff]  ;;  %v101_v42 = vld [vmem:[%s3241_s0 + $0x278] sm:$0xff]  ;;  %v95_v43 = vld [vmem:[%s3241_s0 + $0x248] sm:$0xff]  ;;  %v282_v46 = vpack.c.bf16 %v100_v40, %v93_v39 }
  0x29   :  { %v102_v44 = vld [vmem:[%s3241_s0 + $0x280] sm:$0xff]  ;;  %v283_v47 = vpack.c.bf16 %v101_v42, %v94_v41  ;;  %v113_v50 = vld [vmem:[%s3241_s0 + $0x2d8] sm:$0xff]  ;;  %v107_v51 = vld [vmem:[%s3241_s0 + $0x2a8] sm:$0xff] }
  0x2a   :  { %1161 = vmatpush.bf16.msrb.mxu0 %v1994_v9  ;;  %v284_v48 = vpack.c.bf16 %v102_v44, %v95_v43  ;;  %v106_v49 = vld [vmem:[%s3241_s0 + $0x2a0] sm:$0xff]  ;;  %v108_v53 = vld [vmem:[%s3241_s0 + $0x2b0] sm:$0xff]  ;;  %v115_v54 = vld [vmem:[%s3241_s0 + $0x2e8] sm:$0xff] }
  0x2b   :  { %1250 = vmatpush.bf16.msrb.mxu1 %v2002_v10  ;;  %v114_v52 = vld [vmem:[%s3241_s0 + $0x2e0] sm:$0xff]  ;;  %v109_v55 = vld [vmem:[%s3241_s0 + $0x2b8] sm:$0xff]  ;;  %v116_v56 = vld [vmem:[%s3241_s0 + $0x2f0] sm:$0xff] }
  0x2c   :  { %v1992_v61 = vld [vmem:[%s3242_s1 + $0x118] sm:$0xff]  ;;  %v120_v63 = vld [vmem:[%s3241_s0 + $0x310] sm:$0xff]  ;;  %v127_v0 = vld [vmem:[%s3241_s0 + $0x348] sm:$0xff] }
  0x2d   :  { %v2000_v62 = vld [vmem:[%s3242_s1 + $0x158] sm:$0xff]  ;;  %v128_v2 = vld [vmem:[%s3241_s0 + $0x350] sm:$0xff]  ;;  %v122_v3 = vld [vmem:[%s3241_s0 + $0x320] sm:$0xff] }
  0x2e   :  { %1162 = vmatpush.bf16.msrb.mxu0 %v1993_v35  ;;  %v121_v1 = vld [vmem:[%s3241_s0 + $0x318] sm:$0xff]  ;;  %v2500_v12 = vld [vmem:[%s3243_s2] ss:$0 sm:$0xff]  ;;  %v135_v15 = vld [vmem:[%s3241_s0 + $0x388] sm:$0xff] }
  0x2f   :  { %1251 = vmatpush.bf16.msrb.mxu1 %v2001_v36  ;;  %v129_v4 = vld [vmem:[%s3241_s0 + $0x358] sm:$0xff]  ;;  %v134_v13 = vld [vmem:[%s3241_s0 + $0x380] sm:$0xff]  ;;  %v136_v17 = vld [vmem:[%s3241_s0 + $0x390] sm:$0xff] }
  0x30   :  { %v297_v9 = vpack.c.bf16 %v129_v4, %v122_v3  ;;  %v2013_v11 = vld [vmem:[%s3244_s3 + $0x38] sm:$0xff]  ;;  %v142_v16 = vld [vmem:[%s3241_s0 + $0x3c0] sm:$0xff]  ;;  %v143_v18 = vld [vmem:[%s3241_s0 + $0x3c8] sm:$0xff] }
  0x31   :  { %816 = vmatmul.bf16.gmra.mxu0 %v253_v57  ;;  %v288_v57 = vpack.c.bf16 %v113_v50, %v106_v49  ;;  %1542 = vmatpush.bf16.msrb.mxu3 %v2013_v11  ;;  %v141_v14 = vld [vmem:[%s3241_s0 + $0x3b8] sm:$0xff]  ;;  %v304_v25 = vpack.c.bf16 %v143_v18, %v136_v17  ;;  %v1991_v29 = vld [vmem:[%s3242_s1 + $0x110] sm:$0xff]  ;;  %v155_v40 = vld [vmem:[%s3241_s0 + $0x428] sm:$0xff] }
  0x32   :  { %905 = vmatmul.bf16.gmra.mxu1 %v254_v58  ;;  %v289_v58 = vpack.c.bf16 %v114_v52, %v107_v51  ;;  %1163 = vmatpush.bf16.msrb.mxu0 %v1992_v61  ;;  %v1999_v35 = vld [vmem:[%s3242_s1 + $0x150] sm:$0xff]  ;;  %v149_v41 = vld [vmem:[%s3241_s0 + $0x3f8] sm:$0xff]  ;;  %v150_v43 = vld [vmem:[%s3241_s0 + $0x400] sm:$0xff] }
  0x33   :  { %994 = vmatmul.bf16.gmra.mxu2 %v255_v59  ;;  %v290_v59 = vpack.c.bf16 %v115_v54, %v108_v53  ;;  %1252 = vmatpush.bf16.msrb.mxu1 %v2000_v62  ;;  %v148_v39 = vld [vmem:[%s3241_s0 + $0x3f0] sm:$0xff]  ;;  %v157_v44 = vld [vmem:[%s3241_s0 + $0x438] sm:$0xff]  ;;  %v162_v4 = vld [vmem:[%s3241_s0 + $0x460] sm:$0xff] }
  0x34   :  { %1083 = vmatmul.bf16.gmra.mxu3 %v256_v60  ;;  %v291_v60 = vpack.c.bf16 %v116_v56, %v109_v55  ;;  %v156_v42 = vld [vmem:[%s3241_s0 + $0x430] sm:$0xff]  ;;  %v309_v49 = vpack.c.bf16 %v155_v40, %v148_v39  ;;  %v311_v54 = vpack.c.bf16 %v157_v44, %v150_v43  ;;  %v178_v40 = vld [vmem:[%s3241_s0 + $0x4e0] sm:$0xff] }
  0x35   :  { %v310_v50 = vpack.c.bf16 %v156_v42, %v149_v41  ;;  %v172_v11 = vld [vmem:[%s3241_s0 + $0x4b0] sm:$0xff]  ;;  %v185_v41 = vld [vmem:[%s3241_s0 + $0x518] sm:$0xff]  ;;  %v179_v42 = vld [vmem:[%s3241_s0 + $0x4e8] sm:$0xff] }
  0x36   :  { %1164 = vmatpush.bf16.msrb.mxu0 %v1991_v29  ;;  %v184_v39 = vld [vmem:[%s3241_s0 + $0x510] sm:$0xff]  ;;  %v186_v43 = vld [vmem:[%s3241_s0 + $0x520] sm:$0xff] }
  0x37   :  { %1253 = vmatpush.bf16.msrb.mxu1 %v1999_v35  ;;  %v176_v35 = vld [vmem:[%s3241_s0 + $0x4d0] sm:$0xff] }
  0x41   :  { %821 = vmatmul.bf16.gmra.mxu0 %v260_v5  ;;  %v123_v5 = vld [vmem:[%s3241_s0 + $0x328] sm:$0xff] }
  0x42   :  { %910 = vmatmul.bf16.gmra.mxu1 %v261_v6  ;;  %v130_v6 = vld [vmem:[%s3241_s0 + $0x360] sm:$0xff] }
  0x43   :  { %999 = vmatmul.bf16.gmra.mxu2 %v262_v7  ;;  %v295_v7 = vpack.c.bf16 %v127_v0, %v120_v63  ;;  %v298_v10 = vpack.c.bf16 %v130_v6, %v123_v5  ;;  %v169_v5 = vld [vmem:[%s3241_s0 + $0x498] sm:$0xff]  ;;  %v163_v6 = vld [vmem:[%s3241_s0 + $0x468] sm:$0xff] }
  0x44   :  { %1088 = vmatmul.bf16.gmra.mxu3 %v263_v8  ;;  %v296_v8 = vpack.c.bf16 %v128_v2, %v121_v1 }
  0x51   :  { %826 = vmatmul.bf16.gmra.mxu0 %v267_v19  ;;  %v137_v19 = vld [vmem:[%s3241_s0 + $0x398] sm:$0xff] }
  0x52   :  { %915 = vmatmul.bf16.gmra.mxu1 %v268_v20  ;;  %v144_v20 = vld [vmem:[%s3241_s0 + $0x3d0] sm:$0xff] }
  0x53   :  { %1004 = vmatmul.bf16.gmra.mxu2 %v269_v21  ;;  %v302_v21 = vpack.c.bf16 %v141_v14, %v134_v13  ;;  %v305_v26 = vpack.c.bf16 %v144_v20, %v137_v19 }
  0x54   :  { %1093 = vmatmul.bf16.gmra.mxu3 %v270_v22  ;;  %v303_v22 = vpack.c.bf16 %v142_v16, %v135_v15  ;;  %v316_v15 = vpack.c.bf16 %v169_v5, %v162_v4  ;;  %v197_v4 = vld [vmem:[%s3241_s0 + $0x578] sm:$0xff]  ;;  %v191_v5 = vld [vmem:[%s3241_s0 + $0x548] sm:$0xff] }
  0x61   :  { %831 = vmatmul.bf16.gmra.mxu0 %v274_v31 }
  0x62   :  { %920 = vmatmul.bf16.gmra.mxu1 %v275_v32 }
  0x63   :  { %1009 = vmatmul.bf16.gmra.mxu2 %v276_v33 }
  0x64   :  { %1098 = vmatmul.bf16.gmra.mxu3 %v277_v34 }
  0x71   :  { %836 = vmatmul.bf16.gmra.mxu0 %v281_v45  ;;  %v151_v45 = vld [vmem:[%s3241_s0 + $0x408] sm:$0xff] }
  0x72   :  { %925 = vmatmul.bf16.gmra.mxu1 %v282_v46  ;;  %v158_v46 = vld [vmem:[%s3241_s0 + $0x440] sm:$0xff] }
  0x73   :  { %1014 = vmatmul.bf16.gmra.mxu2 %v283_v47  ;;  %v312_v55 = vpack.c.bf16 %v158_v46, %v151_v45 }
  0x74   :  { %1103 = vmatmul.bf16.gmra.mxu3 %v284_v48 }
  0x81   :  { %841 = vmatmul.bf16.gmra.mxu0 %v288_v57 }
  0x82   :  { %930 = vmatmul.bf16.gmra.mxu1 %v289_v58 }
  0x83   :  { %1019 = vmatmul.bf16.gmra.mxu2 %v290_v59  ;;  %v2012_v59 = vld [vmem:[%s3244_s3 + $0x30] sm:$0xff] }
  0x84   :  { %1108 = vmatmul.bf16.gmra.mxu3 %v291_v60 }
  0x85   :  { %1543 = vmatpush.bf16.msrb.mxu3 %v2012_v59 }
  0x91   :  { %846 = vmatmul.bf16.gmra.mxu0 %v295_v7  ;;  %v170_v7 = vld [vmem:[%s3241_s0 + $0x4a0] sm:$0xff] }
  0x92   :  { %935 = vmatmul.bf16.gmra.mxu1 %v296_v8  ;;  %v164_v8 = vld [vmem:[%s3241_s0 + $0x470] sm:$0xff]  ;;  %v317_v16 = vpack.c.bf16 %v170_v7, %v163_v6  ;;  %v198_v6 = vld [vmem:[%s3241_s0 + $0x580] sm:$0xff] }
  0x93   :  { %1024 = vmatmul.bf16.gmra.mxu2 %v297_v9  ;;  %v171_v9 = vld [vmem:[%s3241_s0 + $0x4a8] sm:$0xff]  ;;  %v192_v7 = vld [vmem:[%s3241_s0 + $0x550] sm:$0xff] }
  0x94   :  { %1113 = vmatmul.bf16.gmra.mxu3 %v298_v10  ;;  %v165_v10 = vld [vmem:[%s3241_s0 + $0x478] sm:$0xff]  ;;  %v318_v20 = vpack.c.bf16 %v171_v9, %v164_v8  ;;  %v199_v8 = vld [vmem:[%s3241_s0 + $0x588] sm:$0xff] }
  0x95   :  { %v193_v9 = vld [vmem:[%s3241_s0 + $0x558] sm:$0xff] }
  0x9e   :  { %v812_v23 = vpop.f32.mrf.mxu0 }
  0x9f   :  { %v901_v24 = vpop.f32.mrf.mxu1  ;;  %v813_v27 = vadd.f32 %v2500_v12, %v812_v23 }
  0xa1   :  { %v902_v28 = vadd.f32 %v901_v24, %v813_v27  ;;  %851 = vmatmul.bf16.gmra.mxu0 %v302_v21  ;;  %v319_v21 = vpack.c.bf16 %v172_v11, %v165_v10  ;;  %v200_v10 = vld [vmem:[%s3241_s0 + $0x590] sm:$0xff] }
  0xa2   :  { %940 = vmatmul.bf16.gmra.mxu1 %v303_v22 }
  0xa3   :  { %1029 = vmatmul.bf16.gmra.mxu2 %v304_v25  ;;  %v1990_v25 = vld [vmem:[%s3242_s1 + $0x108] sm:$0xff] }
  0xa4   :  { %1118 = vmatmul.bf16.gmra.mxu3 %v305_v26  ;;  %1165 = vmatpush.bf16.msrb.mxu0 %v1990_v25  ;;  %v1989_v25 = vld [vmem:[%s3242_s1 + $0x100] sm:$0xff] }
  0xa6   :  { %v990_v30 = vpop.f32.mrf.mxu2  ;;  %v814_v33 = vpop.f32.mrf.mxu0 }
  0xa7   :  { %v1079_v31 = vpop.f32.mrf.mxu3  ;;  %v991_v32 = vadd.f32 %v990_v30, %v902_v28  ;;  %v903_v34 = vpop.f32.mrf.mxu1  ;;  %v815_v36 = vadd.f32 %v2500_v12, %v814_v33 }
  0xa8   :  { %1166 = vmatpush.bf16.msrb.mxu0 %v1989_v25 }
  0xa9   :  { %v2534_v37 = vadd.f32 %v1079_v31, %v991_v32  ;;  %v904_v38 = vadd.f32 %v903_v34, %v815_v36  ;;  %v1998_v31 = vld [vmem:[%s3242_s1 + $0x148] sm:$0xff] }
  0xaa   :  { %1254 = vmatpush.bf16.msrb.mxu1 %v1998_v31  ;;  %v183_v36 = vld [vmem:[%s3241_s0 + $0x508] sm:$0xff]  ;;  %v1997_v31 = vld [vmem:[%s3242_s1 + $0x140] sm:$0xff]  ;;  %s2141_s1 = smov 64  }
  0xab   :  { %v323_v46 = vpack.c.bf16 %v183_v36, %v176_v35  ;;  %v204_v36 = vld [vmem:[%s3241_s0 + $0x5b0] sm:$0xff] }
  0xae   :  { %v992_v47 = vpop.f32.mrf.mxu2  ;;  %v817_v52 = vpop.f32.mrf.mxu0  ;;  %1255 = vmatpush.bf16.msrb.mxu1 %v1997_v31 }
  0xaf   :  { %v1081_v48 = vpop.f32.mrf.mxu3  ;;  %v993_v51 = vadd.f32 %v992_v47, %v904_v38  ;;  %v906_v53 = vpop.f32.mrf.mxu1  ;;  %v818_v56 = vadd.f32 %v2500_v12, %v817_v52  ;;  %v177_v38 = vld [vmem:[%s3241_s0 + $0x4d8] sm:$0xff]  ;;  %v326_v52 = vpack.c.bf16 %v186_v43, %v179_v42  ;;  %v207_v43 = vld [vmem:[%s3241_s0 + $0x5c8] sm:$0xff] }
  0xb0   :  { %v324_v47 = vpack.c.bf16 %v184_v39, %v177_v38  ;;  %v211_v38 = vld [vmem:[%s3241_s0 + $0x5e8] sm:$0xff]  ;;  %v205_v39 = vld [vmem:[%s3241_s0 + $0x5b8] sm:$0xff] }
  0xb1   :  { %v2561_v57 = vadd.f32 %v1081_v48, %v993_v51  ;;  %v907_v58 = vadd.f32 %v906_v53, %v818_v56  ;;  %856 = vmatmul.bf16.gmra.mxu0 %v309_v49  ;;  %v325_v51 = vpack.c.bf16 %v185_v41, %v178_v40  ;;  %v2011_v56 = vld [vmem:[%s3244_s3 + $0x28] sm:$0xff]  ;;  %v212_v40 = vld [vmem:[%s3241_s0 + $0x5f0] sm:$0xff]  ;;  %v206_v41 = vld [vmem:[%s3241_s0 + $0x5c0] sm:$0xff] }
  0xb2   :  { %945 = vmatmul.bf16.gmra.mxu1 %v310_v50  ;;  %1544 = vmatpush.bf16.msrb.mxu3 %v2011_v56  ;;  %v213_v42 = vld [vmem:[%s3241_s0 + $0x5f8] sm:$0xff] }
  0xb3   :  { %1034 = vmatmul.bf16.gmra.mxu2 %v311_v54 }
  0xb4   :  { %1123 = vmatmul.bf16.gmra.mxu3 %v312_v55 }
  0xb6   :  { %v995_v60 = vpop.f32.mrf.mxu2  ;;  %v819_v63 = vpop.f32.mrf.mxu0 }
  0xb7   :  { %v1084_v61 = vpop.f32.mrf.mxu3  ;;  %v996_v62 = vadd.f32 %v995_v60, %v907_v58  ;;  %v908_v0 = vpop.f32.mrf.mxu1  ;;  %v820_v1 = vadd.f32 %v2500_v12, %v819_v63 }
  0xb9   :  { %v2567_v2 = vadd.f32 %v1084_v61, %v996_v62  ;;  %v909_v3 = vadd.f32 %v908_v0, %v820_v1 }
  0xbe   :  { %v997_v13 = vpop.f32.mrf.mxu2  ;;  %v822_v18 = vpop.f32.mrf.mxu0 }
  0xbf   :  { %v1086_v14 = vpop.f32.mrf.mxu3  ;;  %v998_v17 = vadd.f32 %v997_v13, %v909_v3  ;;  %v911_v19 = vpop.f32.mrf.mxu1  ;;  %v823_v22 = vadd.f32 %v2500_v12, %v822_v18  ;;  %v190_v3 = vld [vmem:[%s3241_s0 + $0x540] sm:$0xff] }
  0xc1   :  { %v2594_v23 = vadd.f32 %v1086_v14, %v998_v17  ;;  %v912_v24 = vadd.f32 %v911_v19, %v823_v22  ;;  %861 = vmatmul.bf16.gmra.mxu0 %v316_v15  ;;  %v330_v14 = vpack.c.bf16 %v197_v4, %v190_v3  ;;  %v331_v15 = vpack.c.bf16 %v198_v6, %v191_v5  ;;  %v218_v5 = vld [vmem:[%s3241_s0 + $0x620] sm:$0xff]  ;;  %v225_v6 = vld [vmem:[%s3241_s0 + $0x658] sm:$0xff] }
  0xc2   :  { %950 = vmatmul.bf16.gmra.mxu1 %v317_v16  ;;  %v332_v19 = vpack.c.bf16 %v199_v8, %v192_v7  ;;  %v219_v7 = vld [vmem:[%s3241_s0 + $0x628] sm:$0xff]  ;;  %v226_v8 = vld [vmem:[%s3241_s0 + $0x660] sm:$0xff] }
  0xc3   :  { %1039 = vmatmul.bf16.gmra.mxu2 %v318_v20  ;;  %v333_v20 = vpack.c.bf16 %v200_v10, %v193_v9  ;;  %v220_v9 = vld [vmem:[%s3241_s0 + $0x630] sm:$0xff]  ;;  %v227_v10 = vld [vmem:[%s3241_s0 + $0x668] sm:$0xff] }
  0xc4   :  { %1128 = vmatmul.bf16.gmra.mxu3 %v319_v21 }
  0xc6   :  { %v1000_v26 = vpop.f32.mrf.mxu2  ;;  %v824_v29 = vpop.f32.mrf.mxu0 }
  0xc7   :  { %v1089_v27 = vpop.f32.mrf.mxu3  ;;  %v1001_v28 = vadd.f32 %v1000_v26, %v912_v24  ;;  %v913_v30 = vpop.f32.mrf.mxu1  ;;  %v825_v32 = vadd.f32 %v2500_v12, %v824_v29 }
  0xc9   :  { %v2603_v33 = vadd.f32 %v1089_v27, %v1001_v28  ;;  %v914_v34 = vadd.f32 %v913_v30, %v825_v32 }
  0xce   :  { %v1002_v44 = vpop.f32.mrf.mxu2  ;;  %v827_v49 = vpop.f32.mrf.mxu0 }
  0xcf   :  { %v1091_v45 = vpop.f32.mrf.mxu3  ;;  %v1003_v48 = vadd.f32 %v1002_v44, %v914_v34  ;;  %v916_v50 = vpop.f32.mrf.mxu1  ;;  %v828_v53 = vadd.f32 %v2500_v12, %v827_v49  ;;  %v214_v44 = vld [vmem:[%s3241_s0 + $0x600] sm:$0xff] }
  0xd1   :  { %v2630_v54 = vadd.f32 %v1091_v45, %v1003_v48  ;;  %v917_v55 = vadd.f32 %v916_v50, %v828_v53  ;;  %866 = vmatmul.bf16.gmra.mxu0 %v323_v46  ;;  %v338_v48 = vpack.c.bf16 %v212_v40, %v205_v39  ;;  %v340_v53 = vpack.c.bf16 %v214_v44, %v207_v43  ;;  %v239_v39 = vld [vmem:[%s3241_s0 + $0x6c8] sm:$0xff]  ;;  %v233_v40 = vld [vmem:[%s3241_s0 + $0x698] sm:$0xff] }
  0xd2   :  { %955 = vmatmul.bf16.gmra.mxu1 %v324_v47  ;;  %v337_v47 = vpack.c.bf16 %v211_v38, %v204_v36  ;;  %v232_v38 = vld [vmem:[%s3241_s0 + $0x690] sm:$0xff]  ;;  %v241_v43 = vld [vmem:[%s3241_s0 + $0x6d8] sm:$0xff]  ;;  %v235_v44 = vld [vmem:[%s3241_s0 + $0x6a8] sm:$0xff] }
  0xd3   :  { %1044 = vmatmul.bf16.gmra.mxu2 %v325_v51 }
  0xd4   :  { %1133 = vmatmul.bf16.gmra.mxu3 %v326_v52  ;;  %v339_v52 = vpack.c.bf16 %v213_v42, %v206_v41  ;;  %v240_v41 = vld [vmem:[%s3241_s0 + $0x6d0] sm:$0xff]  ;;  %v234_v42 = vld [vmem:[%s3241_s0 + $0x6a0] sm:$0xff] }
  0xd6   :  { %v1005_v58 = vpop.f32.mrf.mxu2  ;;  %v829_v61 = vpop.f32.mrf.mxu0 }
  0xd7   :  { %v1094_v59 = vpop.f32.mrf.mxu3  ;;  %v1006_v60 = vadd.f32 %v1005_v58, %v917_v55  ;;  %v918_v62 = vpop.f32.mrf.mxu1  ;;  %v830_v63 = vadd.f32 %v2500_v12, %v829_v61  ;;  %v2010_v58 = vld [vmem:[%s3244_s3 + $0x20] sm:$0xff] }
  0xd8   :  { %1545 = vmatpush.bf16.msrb.mxu3 %v2010_v58 }
  0xd9   :  { %v2636_v0 = vadd.f32 %v1094_v59, %v1006_v60  ;;  %v919_v1 = vadd.f32 %v918_v62, %v830_v63 }
  0xde   :  { %v1007_v11 = vpop.f32.mrf.mxu2  ;;  %v832_v17 = vpop.f32.mrf.mxu0 }
  0xdf   :  { %v1096_v13 = vpop.f32.mrf.mxu3  ;;  %v1008_v16 = vadd.f32 %v1007_v11, %v919_v1  ;;  %v921_v18 = vpop.f32.mrf.mxu1  ;;  %v833_v21 = vadd.f32 %v2500_v12, %v832_v17  ;;  %v221_v11 = vld [vmem:[%s3241_s0 + $0x638] sm:$0xff]  ;;  %v345_v17 = vpack.c.bf16 %v226_v8, %v219_v7 }
  0xe1   :  { %v2663_v22 = vadd.f32 %v1096_v13, %v1008_v16  ;;  %v922_v24 = vadd.f32 %v921_v18, %v833_v21  ;;  %871 = vmatmul.bf16.gmra.mxu0 %v330_v14  ;;  %v228_v13 = vld [vmem:[%s3241_s0 + $0x670] sm:$0xff]  ;;  %v344_v16 = vpack.c.bf16 %v225_v6, %v218_v5  ;;  %v346_v21 = vpack.c.bf16 %v227_v10, %v220_v9  ;;  %v26_v9 = vld [vmem:[%s3241_s0 + $0x20] sm:$0xff]  ;;  %v33_v10 = vld [vmem:[%s3241_s0 + $0x58] sm:$0xff] }
  0xe2   :  { %960 = vmatmul.bf16.gmra.mxu1 %v331_v15 }
  0xe3   :  { %1049 = vmatmul.bf16.gmra.mxu2 %v332_v19 }
  0xe4   :  { %1138 = vmatmul.bf16.gmra.mxu3 %v333_v20 }
  0xe6   :  { %v1010_v26 = vpop.f32.mrf.mxu2  ;;  %v834_v29 = vpop.f32.mrf.mxu0 }
  0xe7   :  { %v1099_v27 = vpop.f32.mrf.mxu3  ;;  %v1011_v28 = vadd.f32 %v1010_v26, %v922_v24  ;;  %v923_v30 = vpop.f32.mrf.mxu1  ;;  %v835_v32 = vadd.f32 %v2500_v12, %v834_v29  ;;  %v347_v24 = vpack.c.bf16 %v228_v13, %v221_v11  ;;  %v27_v11 = vld [vmem:[%s3241_s0 + $0x28] sm:$0xff]  ;;  %v34_v13 = vld [vmem:[%s3241_s0 + $0x60] sm:$0xff] }
  0xe9   :  { %v2672_v34 = vadd.f32 %v1099_v27, %v1011_v28  ;;  %v924_v35 = vadd.f32 %v923_v30, %v835_v32 }
  0xee   :  { %v1012_v45 = vpop.f32.mrf.mxu2  ;;  %v837_v50 = vpop.f32.mrf.mxu0 }
  0xef   :  { %v2698_v46 = vpop.f32.mrf.mxu3  ;;  %v2700_v49 = vadd.f32 %v1012_v45, %v924_v35  ;;  %v926_v51 = vpop.f32.mrf.mxu1  ;;  %v838_v55 = vadd.f32 %v2500_v12, %v837_v50  ;;  %v242_v45 = vld [vmem:[%s3241_s0 + $0x6e0] sm:$0xff]  ;;  %v351_v50 = vpack.c.bf16 %v239_v39, %v232_v38 }
  0xf0   :  { %v354_v58 = vpack.c.bf16 %v242_v45, %v235_v44  ;;  %v41_v44 = vld [vmem:[%s3241_s0 + $0x98] sm:$0xff]  ;;  %v48_v45 = vld [vmem:[%s3241_s0 + $0xd0] sm:$0xff] }
  0xf1   :  { %v927_v56 = vadd.f32 %v926_v51, %v838_v55  ;;  %876 = vmatmul.bf16.gmra.mxu0 %v337_v47  ;;  %v352_v51 = vpack.c.bf16 %v240_v41, %v233_v40 }
  0xf2   :  { %965 = vmatmul.bf16.gmra.mxu1 %v338_v48 }
  0xf3   :  { %1054 = vmatmul.bf16.gmra.mxu2 %v339_v52 }
  0xf4   :  { %1143 = vmatmul.bf16.gmra.mxu3 %v340_v53 }
  0xf6   :  { %v1015_v59 = vpop.f32.mrf.mxu2  ;;  %v839_v62 = vpop.f32.mrf.mxu0 }
  0xf7   :  { %v1104_v60 = vpop.f32.mrf.mxu3  ;;  %v1016_v61 = vadd.f32 %v1015_v59, %v927_v56  ;;  %v928_v63 = vpop.f32.mrf.mxu1  ;;  %v840_v1 = vadd.f32 %v2500_v12, %v839_v62  ;;  %v353_v56 = vpack.c.bf16 %v241_v43, %v234_v42  ;;  %v40_v42 = vld [vmem:[%s3241_s0 + $0x90] sm:$0xff]  ;;  %v47_v43 = vld [vmem:[%s3241_s0 + $0xc8] sm:$0xff] }
  0xf9   :  { %v2707_v3 = vadd.f32 %v1104_v60, %v1016_v61  ;;  %v929_v4 = vadd.f32 %v928_v63, %v840_v1  ;;  %v2009_v61 = vld [vmem:[%s3244_s3 + $0x18] sm:$0xff] }
  0xfa   :  { %1546 = vmatpush.bf16.msrb.mxu3 %v2009_v61 }
  0xfe   :  { %v1017_v14 = vpop.f32.mrf.mxu2  ;;  %v842_v19 = vpop.f32.mrf.mxu0 }
  0xff   :  { %v2733_v15 = vpop.f32.mrf.mxu3  ;;  %v2735_v18 = vadd.f32 %v1017_v14, %v929_v4  ;;  %v931_v20 = vpop.f32.mrf.mxu1  ;;  %v843_v25 = vadd.f32 %v2500_v12, %v842_v19  ;;  %v28_v14 = vld [vmem:[%s3241_s0 + $0x30] sm:$0xff] }
 0x101   :  { %v932_v26 = vadd.f32 %v931_v20, %v843_v25  ;;  %881 = vmatmul.bf16.gmra.mxu0 %v344_v16  ;;  %v35_v16 = vld [vmem:[%s3241_s0 + $0x68] sm:$0xff]  ;;  %v250_v20 = vpack.c.bf16 %v33_v10, %v26_v9 }
 0x102   :  { %970 = vmatmul.bf16.gmra.mxu1 %v345_v17 }
 0x103   :  { %1059 = vmatmul.bf16.gmra.mxu2 %v346_v21  ;;  %v251_v21 = vpack.c.bf16 %v34_v13, %v27_v11 }
 0x104   :  { %1148 = vmatmul.bf16.gmra.mxu3 %v347_v24 }
 0x106   :  { %v1020_v27 = vpop.f32.mrf.mxu2  ;;  %v844_v30 = vpop.f32.mrf.mxu0 }
 0x107   :  { %v1109_v28 = vpop.f32.mrf.mxu3  ;;  %v1021_v29 = vadd.f32 %v1020_v27, %v932_v26  ;;  %v933_v31 = vpop.f32.mrf.mxu1  ;;  %v845_v32 = vadd.f32 %v2500_v12, %v844_v30  ;;  %v252_v27 = vpack.c.bf16 %v35_v16, %v28_v14  ;;  %v54_v14 = vld [vmem:[%s3241_s0 + $0x100] sm:$0xff]  ;;  %v61_v16 = vld [vmem:[%s3241_s0 + $0x138] sm:$0xff] }
 0x109   :  { %v2739_v35 = vadd.f32 %v1109_v28, %v1021_v29  ;;  %v934_v36 = vadd.f32 %v933_v31, %v845_v32 }
 0x10e   :  { %v1022_v47 = vpop.f32.mrf.mxu2  ;;  %v847_v53 = vpop.f32.mrf.mxu0 }
 0x10f   :  { %v2765_v48 = vpop.f32.mrf.mxu3  ;;  %v2767_v52 = vadd.f32 %v1022_v47, %v934_v36  ;;  %v936_v55 = vpop.f32.mrf.mxu1  ;;  %v848_v59 = vadd.f32 %v2500_v12, %v847_v53  ;;  %v42_v47 = vld [vmem:[%s3241_s0 + $0xa0] sm:$0xff] }
 0x111   :  { %v937_v60 = vadd.f32 %v936_v55, %v848_v59  ;;  %886 = vmatmul.bf16.gmra.mxu0 %v351_v50  ;;  %v49_v50 = vld [vmem:[%s3241_s0 + $0xd8] sm:$0xff]  ;;  %v257_v55 = vpack.c.bf16 %v47_v43, %v40_v42 }
 0x112   :  { %975 = vmatmul.bf16.gmra.mxu1 %v352_v51  ;;  %v259_v61 = vpack.c.bf16 %v49_v50, %v42_v47 }
 0x113   :  { %1064 = vmatmul.bf16.gmra.mxu2 %v353_v56  ;;  %v258_v56 = vpack.c.bf16 %v48_v45, %v41_v44 }
 0x114   :  { %1153 = vmatmul.bf16.gmra.mxu3 %v354_v58 }
 0x116   :  { %v1025_v62 = vpop.f32.mrf.mxu2  ;;  %v849_v4 = vpop.f32.mrf.mxu0 }
 0x117   :  { %v1114_v63 = vpop.f32.mrf.mxu3  ;;  %v1026_v1 = vadd.f32 %v1025_v62, %v937_v60  ;;  %v938_v5 = vpop.f32.mrf.mxu1  ;;  %v850_v6 = vadd.f32 %v2500_v12, %v849_v4 }
 0x119   :  { %v2774_v7 = vadd.f32 %v1114_v63, %v1026_v1  ;;  %v939_v8 = vadd.f32 %v938_v5, %v850_v6  ;;  %v2008_v1 = vld [vmem:[%s3244_s3 + $0x10] sm:$0xff] }
 0x11a   :  { %1547 = vmatpush.bf16.msrb.mxu3 %v2008_v1 }
 0x11e   :  { %v1027_v17 = vpop.f32.mrf.mxu2  ;;  %v852_v25 = vpop.f32.mrf.mxu0 }
 0x11f   :  { %v2794_v19 = vpop.f32.mrf.mxu3  ;;  %v2796_v24 = vadd.f32 %v1027_v17, %v939_v8  ;;  %v941_v26 = vpop.f32.mrf.mxu1  ;;  %v853_v28 = vadd.f32 %v2500_v12, %v852_v25  ;;  %v55_v17 = vld [vmem:[%s3241_s0 + $0x108] sm:$0xff] }
 0x120   :  { %v63_v25 = vld [vmem:[%s3241_s0 + $0x148] sm:$0xff] }
 0x121   :  { %v942_v29 = vadd.f32 %v941_v26, %v853_v28  ;;  %1167 = vmatmul.bf16.vlgmr.msrb.gmra.mxu0 %v250_v20  ;;  %v62_v20 = vld [vmem:[%s3241_s0 + $0x140] sm:$0xff]  ;;  %v264_v28 = vpack.c.bf16 %v61_v16, %v54_v14  ;;  %v2007_v16 = vld [vmem:[%s3244_s3 + $0x8] sm:$0xff] }
 0x122   :  { %1256 = vmatmul.bf16.vlgmr.msrb.gmra.mxu1 %v251_v21  ;;  %v56_v21 = vld [vmem:[%s3241_s0 + $0x110] sm:$0xff]  ;;  %1548 = vmatpush.bf16.msrb.mxu3 %v2007_v16  ;;  %v103_v16 = vld [vmem:[%s3241_s0 + $0x288] sm:$0xff] }
 0x123   :  { %1909 = vmatmul.msk.bf16.vlgmr.msrb.gmra.mxu2 %vm754_vm0, %v252_v27 }
 0x126   :  { %v1030_v30 = vpop.f32.mrf.mxu2  ;;  %v854_v36 = vpop.f32.mrf.mxu0 }
 0x127   :  { %v1119_v31 = vpop.f32.mrf.mxu3  ;;  %v1031_v32 = vadd.f32 %v1030_v30, %v942_v29  ;;  %v943_v38 = vpop.f32.mrf.mxu1  ;;  %v855_v39 = vadd.f32 %v2500_v12, %v854_v36  ;;  %v265_v29 = vpack.c.bf16 %v62_v20, %v55_v17  ;;  %v266_v36 = vpack.c.bf16 %v63_v25, %v56_v21 }
 0x129   :  { %v2801_v40 = vadd.f32 %v1119_v31, %v1031_v32  ;;  %v944_v41 = vadd.f32 %v943_v38, %v855_v39 }
 0x12e   :  { %v1032_v51 = vpop.f32.mrf.mxu2  ;;  %v857_v59 = vpop.f32.mrf.mxu0 }
 0x12f   :  { %v2821_v53 = vpop.f32.mrf.mxu3  ;;  %v2823_v58 = vadd.f32 %v1032_v51, %v944_v41  ;;  %v946_v60 = vpop.f32.mrf.mxu1  ;;  %v858_v62 = vadd.f32 %v2500_v12, %v857_v59  ;;  %v69_v59 = vld [vmem:[%s3241_s0 + $0x178] sm:$0xff] }
 0x131   :  { %v947_v63 = vadd.f32 %v946_v60, %v858_v62  ;;  %1172 = vmatmul.bf16.gmra.mxu0 %v257_v55  ;;  %v68_v55 = vld [vmem:[%s3241_s0 + $0x170] sm:$0xff]  ;;  %v77_v62 = vld [vmem:[%s3241_s0 + $0x1b8] sm:$0xff] }
 0x132   :  { %1261 = vmatmul.bf16.gmra.mxu1 %v258_v56  ;;  %v75_v56 = vld [vmem:[%s3241_s0 + $0x1a8] sm:$0xff]  ;;  %v76_v60 = vld [vmem:[%s3241_s0 + $0x1b0] sm:$0xff] }
 0x133   :  { %1910 = vmatmul.msk.bf16.gmra.mxu2 %vm754_vm0, %v259_v61  ;;  %v70_v61 = vld [vmem:[%s3241_s0 + $0x180] sm:$0xff] }
 0x136   :  { %v1035_v4 = vpop.f32.mrf.mxu2  ;;  %v859_v8 = vpop.f32.mrf.mxu0 }
 0x137   :  { %v1124_v5 = vpop.f32.mrf.mxu3  ;;  %v1036_v6 = vadd.f32 %v1035_v4, %v947_v63  ;;  %v948_v9 = vpop.f32.mrf.mxu1  ;;  %v860_v10 = vadd.f32 %v2500_v12, %v859_v8  ;;  %v271_v4 = vpack.c.bf16 %v75_v56, %v68_v55 }
 0x139   :  { %v2831_v11 = vadd.f32 %v1124_v5, %v1036_v6  ;;  %v949_v13 = vadd.f32 %v948_v9, %v860_v10  ;;  %v272_v5 = vpack.c.bf16 %v76_v60, %v69_v59  ;;  %v273_v10 = vpack.c.bf16 %v77_v62, %v70_v61 }
 0x13e   :  { %v1037_v26 = vpop.f32.mrf.mxu2  ;;  %v862_v31 = vpop.f32.mrf.mxu0 }
 0x13f   :  { %v2851_v27 = vpop.f32.mrf.mxu3  ;;  %v2853_v30 = vadd.f32 %v1037_v26, %v949_v13  ;;  %v951_v32 = vpop.f32.mrf.mxu1  ;;  %v863_v38 = vadd.f32 %v2500_v12, %v862_v31 }
 0x141   :  { %v952_v39 = vadd.f32 %v951_v32, %v863_v38  ;;  %1177 = vmatmul.bf16.gmra.mxu0 %v264_v28  ;;  %v82_v32 = vld [vmem:[%s3241_s0 + $0x1e0] sm:$0xff]  ;;  %v83_v38 = vld [vmem:[%s3241_s0 + $0x1e8] sm:$0xff] }
 0x142   :  { %1266 = vmatmul.bf16.gmra.mxu1 %v265_v29 }
 0x143   :  { %1911 = vmatmul.msk.bf16.gmra.mxu2 %vm754_vm0, %v266_v36  ;;  %v89_v36 = vld [vmem:[%s3241_s0 + $0x218] sm:$0xff] }
 0x146   :  { %v1040_v41 = vpop.f32.mrf.mxu2  ;;  %v864_v44 = vpop.f32.mrf.mxu0 }
 0x147   :  { %v1129_v42 = vpop.f32.mrf.mxu3  ;;  %v1041_v43 = vadd.f32 %v1040_v41, %v952_v39  ;;  %v953_v45 = vpop.f32.mrf.mxu1  ;;  %v865_v47 = vadd.f32 %v2500_v12, %v864_v44  ;;  %v90_v39 = vld [vmem:[%s3241_s0 + $0x220] sm:$0xff]  ;;  %v84_v41 = vld [vmem:[%s3241_s0 + $0x1f0] sm:$0xff] }
 0x149   :  { %v2858_v50 = vadd.f32 %v1129_v42, %v1041_v43  ;;  %v954_v51 = vadd.f32 %v953_v45, %v865_v47  ;;  %v91_v42 = vld [vmem:[%s3241_s0 + $0x228] sm:$0xff]  ;;  %v278_v45 = vpack.c.bf16 %v89_v36, %v82_v32  ;;  %v279_v47 = vpack.c.bf16 %v90_v39, %v83_v38 }
 0x14a   :  { %v280_v59 = vpack.c.bf16 %v91_v42, %v84_v41 }
 0x14e   :  { %v1042_v63 = vpop.f32.mrf.mxu2  ;;  %v867_v8 = vpop.f32.mrf.mxu0 }
 0x14f   :  { %v2878_v1 = vpop.f32.mrf.mxu3  ;;  %v2880_v6 = vadd.f32 %v1042_v63, %v954_v51  ;;  %v956_v9 = vpop.f32.mrf.mxu1  ;;  %v868_v13 = vadd.f32 %v2500_v12, %v867_v8 }
 0x151   :  { %v957_v14 = vadd.f32 %v956_v9, %v868_v13  ;;  %1182 = vmatmul.bf16.gmra.mxu0 %v271_v4 }
 0x152   :  { %1271 = vmatmul.bf16.gmra.mxu1 %v272_v5 }
 0x153   :  { %1912 = vmatmul.msk.bf16.gmra.mxu2 %vm754_vm0, %v273_v10 }
 0x156   :  { %v1045_v17 = vpop.f32.mrf.mxu2  ;;  %v869_v25 = vpop.f32.mrf.mxu0 }
 0x157   :  { %v1134_v20 = vpop.f32.mrf.mxu3  ;;  %v1046_v21 = vadd.f32 %v1045_v17, %v957_v14  ;;  %v958_v26 = vpop.f32.mrf.mxu1  ;;  %v870_v28 = vadd.f32 %v2500_v12, %v869_v25  ;;  %v96_v14 = vld [vmem:[%s3241_s0 + $0x250] sm:$0xff]  ;;  %v97_v17 = vld [vmem:[%s3241_s0 + $0x258] sm:$0xff] }
 0x158   :  { %v105_v25 = vld [vmem:[%s3241_s0 + $0x298] sm:$0xff] }
 0x159   :  { %v2888_v29 = vadd.f32 %v1134_v20, %v1046_v21  ;;  %v959_v31 = vadd.f32 %v958_v26, %v870_v28  ;;  %v104_v20 = vld [vmem:[%s3241_s0 + $0x290] sm:$0xff]  ;;  %v98_v21 = vld [vmem:[%s3241_s0 + $0x260] sm:$0xff] }
 0x15a   :  { %v286_v32 = vpack.c.bf16 %v104_v20, %v97_v17  ;;  %v287_v41 = vpack.c.bf16 %v105_v25, %v98_v21 }
 0x15e   :  { %v1047_v43 = vpop.f32.mrf.mxu2  ;;  %v872_v55 = vpop.f32.mrf.mxu0 }
 0x15f   :  { %v2908_v44 = vpop.f32.mrf.mxu3  ;;  %v2910_v51 = vadd.f32 %v1047_v43, %v959_v31  ;;  %v961_v56 = vpop.f32.mrf.mxu1  ;;  %v873_v60 = vadd.f32 %v2500_v12, %v872_v55  ;;  %v285_v31 = vpack.c.bf16 %v103_v16, %v96_v14  ;;  %v119_v14 = vld [vmem:[%s3241_s0 + $0x308] sm:$0xff] }
 0x161   :  { %v962_v61 = vadd.f32 %v961_v56, %v873_v60  ;;  %1187 = vmatmul.bf16.gmra.mxu0 %v278_v45  ;;  %v2006_v45 = vld [vmem:[%s3244_s3] sm:$0xff] }
 0x162   :  { %1276 = vmatmul.bf16.gmra.mxu1 %v279_v47  ;;  %1549 = vmatpush.bf16.msrb.mxu3 %v2006_v45 }
 0x163   :  { %1913 = vmatmul.msk.bf16.gmra.mxu2 %vm754_vm0, %v280_v59 }
 0x166   :  { %v1050_v62 = vpop.f32.mrf.mxu2  ;;  %v874_v5 = vpop.f32.mrf.mxu0 }
 0x167   :  { %v1139_v63 = vpop.f32.mrf.mxu3  ;;  %v1051_v4 = vadd.f32 %v1050_v62, %v962_v61  ;;  %v963_v8 = vpop.f32.mrf.mxu1  ;;  %v875_v9 = vadd.f32 %v2500_v12, %v874_v5  ;;  %v117_v5 = vld [vmem:[%s3241_s0 + $0x2f8] sm:$0xff] }
 0x169   :  { %v2915_v10 = vadd.f32 %v1139_v63, %v1051_v4  ;;  %v964_v13 = vadd.f32 %v963_v8, %v875_v9  ;;  %v110_v4 = vld [vmem:[%s3241_s0 + $0x2c0] sm:$0xff]  ;;  %v111_v8 = vld [vmem:[%s3241_s0 + $0x2c8] sm:$0xff] }
 0x16a   :  { %v118_v9 = vld [vmem:[%s3241_s0 + $0x300] sm:$0xff]  ;;  %v292_v20 = vpack.c.bf16 %v117_v5, %v110_v4  ;;  %v132_v4 = vld [vmem:[%s3241_s0 + $0x370] sm:$0xff] }
 0x16b   :  { %v293_v21 = vpack.c.bf16 %v118_v9, %v111_v8  ;;  %v126_v5 = vld [vmem:[%s3241_s0 + $0x340] sm:$0xff]  ;;  %v133_v8 = vld [vmem:[%s3241_s0 + $0x378] sm:$0xff] }
 0x16e   :  { %v1052_v26 = vpop.f32.mrf.mxu2  ;;  %v877_v38 = vpop.f32.mrf.mxu0 }
 0x16f   :  { %v2935_v28 = vpop.f32.mrf.mxu3  ;;  %v2937_v36 = vadd.f32 %v1052_v26, %v964_v13  ;;  %v966_v39 = vpop.f32.mrf.mxu1  ;;  %v878_v42 = vadd.f32 %v2500_v12, %v877_v38  ;;  %v112_v13 = vld [vmem:[%s3241_s0 + $0x2d0] sm:$0xff] }
 0x171   :  { %v967_v43 = vadd.f32 %v966_v39, %v878_v42  ;;  %1192 = vmatmul.bf16.gmra.mxu0 %v285_v31 }
 0x172   :  { %1281 = vmatmul.bf16.gmra.mxu1 %v286_v32  ;;  %v294_v32 = vpack.c.bf16 %v119_v14, %v112_v13 }
 0x173   :  { %1914 = vmatmul.msk.bf16.gmra.mxu2 %vm754_vm0, %v287_v41 }
 0x176   :  { %v1055_v47 = vpop.f32.mrf.mxu2  ;;  %v879_v59 = vpop.f32.mrf.mxu0 }
 0x177   :  { %v1144_v55 = vpop.f32.mrf.mxu3  ;;  %v1056_v56 = vadd.f32 %v1055_v47, %v967_v43  ;;  %v968_v60 = vpop.f32.mrf.mxu1  ;;  %v880_v61 = vadd.f32 %v2500_v12, %v879_v59 }
 0x179   :  { %v2945_v62 = vadd.f32 %v1144_v55, %v1056_v56  ;;  %v969_v63 = vadd.f32 %v968_v60, %v880_v61  ;;  %v124_v60 = vld [vmem:[%s3241_s0 + $0x330] sm:$0xff]  ;;  %v131_v61 = vld [vmem:[%s3241_s0 + $0x368] sm:$0xff] }
 0x17a   :  { %v299_v14 = vpack.c.bf16 %v131_v61, %v124_v60  ;;  %v138_v60 = vld [vmem:[%s3241_s0 + $0x3a0] sm:$0xff]  ;;  %v145_v61 = vld [vmem:[%s3241_s0 + $0x3d8] sm:$0xff] }
 0x17e   :  { %v1057_v16 = vpop.f32.mrf.mxu2  ;;  %v882_v26 = vpop.f32.mrf.mxu0 }
 0x17f   :  { %v2965_v17 = vpop.f32.mrf.mxu3  ;;  %v2967_v25 = vadd.f32 %v1057_v16, %v969_v63  ;;  %v971_v31 = vpop.f32.mrf.mxu1  ;;  %v883_v38 = vadd.f32 %v2500_v12, %v882_v26  ;;  %v125_v63 = vld [vmem:[%s3241_s0 + $0x338] sm:$0xff] }
 0x180   :  { %v300_v16 = vpack.c.bf16 %v132_v4, %v125_v63  ;;  %v139_v63 = vld [vmem:[%s3241_s0 + $0x3a8] sm:$0xff]  ;;  %v146_v4 = vld [vmem:[%s3241_s0 + $0x3e0] sm:$0xff] }
 0x181   :  { %v972_v39 = vadd.f32 %v971_v31, %v883_v38  ;;  %1197 = vmatmul.bf16.gmra.mxu0 %v292_v20  ;;  %v301_v31 = vpack.c.bf16 %v133_v8, %v126_v5  ;;  %v147_v5 = vld [vmem:[%s3241_s0 + $0x3e8] sm:$0xff] }
 0x182   :  { %1286 = vmatmul.bf16.gmra.mxu1 %v293_v21 }
 0x183   :  { %1915 = vmatmul.msk.bf16.gmra.mxu2 %vm754_vm0, %v294_v32 }
 0x186   :  { %v1060_v41 = vpop.f32.mrf.mxu2  ;;  %v884_v45 = vpop.f32.mrf.mxu0 }
 0x187   :  { %v1149_v42 = vpop.f32.mrf.mxu3  ;;  %v1061_v43 = vadd.f32 %v1060_v41, %v972_v39  ;;  %v973_v47 = vpop.f32.mrf.mxu1  ;;  %v885_v55 = vadd.f32 %v2500_v12, %v884_v45 }
 0x189   :  { %v2972_v56 = vadd.f32 %v1149_v42, %v1061_v43  ;;  %v974_v59 = vadd.f32 %v973_v47, %v885_v55 }
 0x18e   :  { %v1062_v9 = vpop.f32.mrf.mxu2  ;;  %v887_v21 = vpop.f32.mrf.mxu0 }
 0x18f   :  { %v2992_v13 = vpop.f32.mrf.mxu3  ;;  %v2994_v20 = vadd.f32 %v1062_v9, %v974_v59  ;;  %v976_v26 = vpop.f32.mrf.mxu1  ;;  %v888_v32 = vadd.f32 %v2500_v12, %v887_v21  ;;  %v306_v9 = vpack.c.bf16 %v145_v61, %v138_v60  ;;  %v161_v60 = vld [vmem:[%s3241_s0 + $0x458] sm:$0xff] }
 0x191   :  { %v977_v38 = vadd.f32 %v976_v26, %v888_v32  ;;  %1202 = vmatmul.bf16.gmra.mxu0 %v299_v14  ;;  %v307_v14 = vpack.c.bf16 %v146_v4, %v139_v63 }
 0x192   :  { %1291 = vmatmul.bf16.gmra.mxu1 %v300_v16 }
 0x193   :  { %1916 = vmatmul.msk.bf16.gmra.mxu2 %vm754_vm0, %v301_v31 }
 0x196   :  { %v1065_v39 = vpop.f32.mrf.mxu2  ;;  %v889_v43 = vpop.f32.mrf.mxu0 }
 0x197   :  { %v1154_v41 = vpop.f32.mrf.mxu3  ;;  %v1066_v42 = vadd.f32 %v1065_v39, %v977_v38  ;;  %v978_v45 = vpop.f32.mrf.mxu1  ;;  %v890_v47 = vadd.f32 %v2500_v12, %v889_v43  ;;  %v140_v12 = vld [vmem:[%s3241_s0 + $0x3b0] sm:$0xff] }
 0x198   :  { %v308_v31 = vpack.c.bf16 %v147_v5, %v140_v12  ;;  %v152_v43 = vld [vmem:[%s3241_s0 + $0x410] sm:$0xff] }
 0x199   :  { %v2999_v55 = vadd.f32 %v1154_v41, %v1066_v42  ;;  %v979_v59 = vadd.f32 %v978_v45, %v890_v47  ;;  %v159_v47 = vld [vmem:[%s3241_s0 + $0x448] sm:$0xff] }
 0x19a   :  { %v313_v12 = vpack.c.bf16 %v159_v47, %v152_v43  ;;  %v166_v43 = vld [vmem:[%s3241_s0 + $0x480] sm:$0xff]  ;;  %v173_v47 = vld [vmem:[%s3241_s0 + $0x4b8] sm:$0xff] }
 0x19b   :  { %3247 = vst [vmem:[#allocation5_spill] sm:$0xff] %v2999_v55 }
 0x19e   :  { %v1067_v8 = vpop.f32.mrf.mxu2  ;;  %v1168_v21 = vpop.f32.mrf.mxu0 }
 0x19f   :  { %v3019_v16 = vadd.f32 %v1067_v8, %v979_v59  ;;  %v1257_v26 = vpop.f32.mrf.mxu1  ;;  %v1169_v38 = vadd.f32 %v1168_v21, %v2534_v37  ;;  %v153_v59 = vld [vmem:[%s3241_s0 + $0x418] sm:$0xff]  ;;  %v160_v37 = vld [vmem:[%s3241_s0 + $0x450] sm:$0xff] }
 0x1a0   :  { %v314_v5 = vpack.c.bf16 %v160_v37, %v153_v59  ;;  %v167_v59 = vld [vmem:[%s3241_s0 + $0x488] sm:$0xff] }
 0x1a1   :  { %1207 = vmatmul.bf16.gmra.mxu0 %v306_v9  ;;  %v1258_v45 = vadd.f32 %v1257_v26, %v1169_v38 }
 0x1a2   :  { %1296 = vmatmul.bf16.gmra.mxu1 %v307_v14 }
 0x1a3   :  { %1917 = vmatmul.msk.bf16.gmra.mxu2 %vm754_vm0, %v308_v31 }
 0x1a6   :  { %v1346_v32 = vpop.f32.mrf.mxu2  ;;  %v1170_v39 = vpop.f32.mrf.mxu0 }
 0x1a7   :  { %v1259_v41 = vpop.f32.mrf.mxu1  ;;  %v1171_v42 = vadd.f32 %v1170_v39, %v2561_v57  ;;  %v154_v57 = vld [vmem:[%s3241_s0 + $0x420] sm:$0xff]  ;;  %v1347_v61 = vadd.f32 %v1346_v32, %v1258_v45 }
 0x1a8   :  { %v315_v21 = vpack.c.bf16 %v161_v60, %v154_v57 }
 0x1a9   :  { %v1260_v63 = vadd.f32 %v1259_v41, %v1171_v42  ;;  %v1426_v26 = vmax.f32 %v1347_v61, 0.0  ;;  %v320_v61 = vpack.c.bf16 %v173_v47, %v166_v43  ;;  %v187_v43 = vld [vmem:[%s3241_s0 + $0x528] sm:$0xff]  ;;  %v189_v47 = vld [vmem:[%s3241_s0 + $0x538] sm:$0xff] }
 0x1ae   :  { %v1348_v4 = vpop.f32.mrf.mxu2  ;;  %v1173_v9 = vpop.f32.mrf.mxu0 }
 0x1af   :  { %v1349_v8 = vadd.f32 %v1348_v4, %v1260_v63  ;;  %v1262_v14 = vpop.f32.mrf.mxu1  ;;  %v1174_v55 = vadd.f32 %v1173_v9, %v2567_v2  ;;  %v174_v2 = vld [vmem:[%s3241_s0 + $0x4c0] sm:$0xff] }
 0x1b0   :  { %v321_v63 = vpack.c.bf16 %v174_v2, %v167_v59 }
 0x1b1   :  { %v1427_v31 = vmax.f32 %v1349_v8, 0.0  ;;  %1212 = vmatmul.bf16.gmra.mxu0 %v313_v12  ;;  %v1263_v45 = vadd.f32 %v1262_v14, %v1174_v55  ;;  %v175_v55 = vld [vmem:[%s3241_s0 + $0x4c8] sm:$0xff] }
 0x1b2   :  { %1301 = vmatmul.bf16.gmra.mxu1 %v314_v5 }
 0x1b3   :  { %v1458_v38 = vpack.c.bf16 %v1427_v31, %v1426_v26  ;;  %1918 = vmatmul.msk.bf16.gmra.mxu2 %vm754_vm0, %v315_v21 }
 0x1b5   :  { %1550 = vmatmul.bf16.vlgmr.msrb.gmra.mxu3 %v1458_v38 }
 0x1b6   :  { %v1351_v39 = vpop.f32.mrf.mxu2  ;;  %v1175_v32 = vpop.f32.mrf.mxu0 }
 0x1b7   :  { %v1264_v41 = vpop.f32.mrf.mxu1  ;;  %v1176_v42 = vadd.f32 %v1175_v32, %v2594_v23  ;;  %v168_v23 = vld [vmem:[%s3241_s0 + $0x490] sm:$0xff]  ;;  %v1352_v37 = vadd.f32 %v1351_v39, %v1263_v45  ;;  %v181_v45 = vld [vmem:[%s3241_s0 + $0x4f8] sm:$0xff] }
 0x1b8   :  { %v322_v8 = vpack.c.bf16 %v175_v55, %v168_v23 }
 0x1b9   :  { %v1265_v57 = vadd.f32 %v1264_v41, %v1176_v42  ;;  %v1428_v9 = vmax.f32 %v1352_v37, 0.0  ;;  %v180_v41 = vld [vmem:[%s3241_s0 + $0x4f0] sm:$0xff] }
 0x1ba   :  { %v327_v55 = vpack.c.bf16 %v187_v43, %v180_v41  ;;  %v203_v41 = vld [vmem:[%s3241_s0 + $0x5a8] sm:$0xff] }
 0x1be   :  { %v1353_v60 = vpop.f32.mrf.mxu2  ;;  %v1178_v12 = vpop.f32.mrf.mxu0 }
 0x1bf   :  { %v1354_v4 = vadd.f32 %v1353_v60, %v1265_v57  ;;  %v1267_v5 = vpop.f32.mrf.mxu1  ;;  %v1179_v31 = vadd.f32 %v1178_v12, %v2603_v33  ;;  %v188_v33 = vld [vmem:[%s3241_s0 + $0x530] sm:$0xff] }
 0x1c0   :  { %v328_v37 = vpack.c.bf16 %v188_v33, %v181_v45 }
 0x1c1   :  { %v1429_v14 = vmax.f32 %v1354_v4, 0.0  ;;  %1217 = vmatmul.bf16.gmra.mxu0 %v320_v61  ;;  %v1268_v42 = vadd.f32 %v1267_v5, %v1179_v31  ;;  %v194_v31 = vld [vmem:[%s3241_s0 + $0x560] sm:$0xff] }
 0x1c2   :  { %1306 = vmatmul.bf16.gmra.mxu1 %v321_v63 }
 0x1c3   :  { %1919 = vmatmul.msk.bf16.gmra.mxu2 %vm754_vm0, %v322_v8  ;;  %v1459_v21 = vpack.c.bf16 %v1429_v14, %v1428_v9 }
 0x1c5   :  { %1555 = vmatmul.bf16.gmra.mxu3 %v1459_v21 }
 0x1c6   :  { %v1356_v26 = vpop.f32.mrf.mxu2  ;;  %v1180_v38 = vpop.f32.mrf.mxu0 }
 0x1c7   :  { %v1269_v39 = vpop.f32.mrf.mxu1  ;;  %v1181_v32 = vadd.f32 %v1180_v38, %v2630_v54  ;;  %v182_v54 = vld [vmem:[%s3241_s0 + $0x500] sm:$0xff]  ;;  %v1357_v59 = vadd.f32 %v1356_v26, %v1268_v42 }
 0x1c8   :  { %v329_v63 = vpack.c.bf16 %v189_v47, %v182_v54 }
 0x1c9   :  { %v1270_v2 = vadd.f32 %v1269_v39, %v1181_v32  ;;  %v1430_v4 = vmax.f32 %v1357_v59, 0.0  ;;  %v201_v39 = vld [vmem:[%s3241_s0 + $0x598] sm:$0xff]  ;;  %v195_v32 = vld [vmem:[%s3241_s0 + $0x568] sm:$0xff] }
 0x1ca   :  { %v334_v33 = vpack.c.bf16 %v201_v39, %v194_v31 }
 0x1ce   :  { %v1358_v23 = vpop.f32.mrf.mxu2  ;;  %v1183_v60 = vpop.f32.mrf.mxu0 }
 0x1cf   :  { %v1359_v57 = vadd.f32 %v1358_v23, %v1270_v2  ;;  %v1272_v61 = vpop.f32.mrf.mxu1  ;;  %v1184_v9 = vadd.f32 %v1183_v60, %v2636_v0  ;;  %v202_v0 = vld [vmem:[%s3241_s0 + $0x5a0] sm:$0xff] }
 0x1d0   :  { %v335_v54 = vpack.c.bf16 %v202_v0, %v195_v32 }
 0x1d1   :  { %v1431_v12 = vmax.f32 %v1359_v57, 0.0  ;;  %1222 = vmatmul.bf16.gmra.mxu0 %v327_v55  ;;  %v1273_v38 = vadd.f32 %v1272_v61, %v1184_v9  ;;  %v1102_v61 = vadd.f32 %v2698_v46, %v2700_v49  ;;  %v210_v46 = vld [vmem:[%s3241_s0 + $0x5e0] sm:$0xff]  ;;  %v217_v49 = vld [vmem:[%s3241_s0 + $0x618] sm:$0xff] }
 0x1d2   :  { %1311 = vmatmul.bf16.gmra.mxu1 %v328_v37 }
 0x1d3   :  { %1920 = vmatmul.msk.bf16.gmra.mxu2 %vm754_vm0, %v329_v63  ;;  %v1460_v5 = vpack.c.bf16 %v1431_v12, %v1430_v4 }
 0x1d5   :  { %1560 = vmatmul.bf16.gmra.mxu3 %v1460_v5 }
 0x1d6   :  { %v1361_v8 = vpop.f32.mrf.mxu2  ;;  %v1185_v14 = vpop.f32.mrf.mxu0 }
 0x1d7   :  { %v1274_v21 = vpop.f32.mrf.mxu1  ;;  %v1186_v26 = vadd.f32 %v1185_v14, %v2663_v22  ;;  %v196_v22 = vld [vmem:[%s3241_s0 + $0x570] sm:$0xff]  ;;  %v1362_v42 = vadd.f32 %v1361_v8, %v1273_v38  ;;  %v215_v14 = vld [vmem:[%s3241_s0 + $0x608] sm:$0xff] }
 0x1d8   :  { %v336_v23 = vpack.c.bf16 %v203_v41, %v196_v22  ;;  %v208_v8 = vld [vmem:[%s3241_s0 + $0x5d0] sm:$0xff] }
 0x1d9   :  { %v1275_v43 = vadd.f32 %v1274_v21, %v1186_v26  ;;  %v1432_v55 = vmax.f32 %v1362_v42, 0.0  ;;  %v209_v21 = vld [vmem:[%s3241_s0 + $0x5d8] sm:$0xff]  ;;  %v341_v39 = vpack.c.bf16 %v215_v14, %v208_v8  ;;  %v343_v42 = vpack.c.bf16 %v217_v49, %v210_v46 }
 0x1de   :  { %v1363_v45 = vpop.f32.mrf.mxu2  ;;  %v1188_v59 = vpop.f32.mrf.mxu0 }
 0x1df   :  { %v1364_v47 = vadd.f32 %v1363_v45, %v1275_v43  ;;  %v1277_v2 = vpop.f32.mrf.mxu1  ;;  %v1189_v63 = vadd.f32 %v1188_v59, %v2672_v34  ;;  %v216_v34 = vld [vmem:[%s3241_s0 + $0x610] sm:$0xff] }
 0x1e0   :  { %v342_v32 = vpack.c.bf16 %v216_v34, %v209_v21 }
 0x1e1   :  { %v1433_v37 = vmax.f32 %v1364_v47, 0.0  ;;  %1227 = vmatmul.bf16.gmra.mxu0 %v334_v33  ;;  %v1278_v9 = vadd.f32 %v1277_v2, %v1189_v63  ;;  %v1107_v47 = vadd.f32 %v2733_v15, %v2735_v18  ;;  %v224_v15 = vld [vmem:[%s3241_s0 + $0x650] sm:$0xff]  ;;  %v231_v18 = vld [vmem:[%s3241_s0 + $0x688] sm:$0xff] }
 0x1e2   :  { %1316 = vmatmul.bf16.gmra.mxu1 %v335_v54  ;;  %v350_v34 = vpack.c.bf16 %v231_v18, %v224_v15  ;;  %v1117_v18 = vadd.f32 %v2794_v19, %v2796_v24  ;;  %v1122_v19 = vadd.f32 %v2821_v53, %v2823_v58 }
 0x1e3   :  { %1921 = vmatmul.msk.bf16.gmra.mxu2 %vm754_vm0, %v336_v23  ;;  %v1461_v57 = vpack.c.bf16 %v1433_v37, %v1432_v55  ;;  %v222_v37 = vld [vmem:[%s3241_s0 + $0x640] sm:$0xff] }
 0x1e5   :  { %1565 = vmatmul.bf16.gmra.mxu3 %v1461_v57 }
 0x1e6   :  { %v1366_v60 = vpop.f32.mrf.mxu2  ;;  %v1190_v4 = vpop.f32.mrf.mxu0 }
 0x1e7   :  { %v1279_v12 = vpop.f32.mrf.mxu1  ;;  %v1191_v5 = vadd.f32 %v1190_v4, %v1102_v61  ;;  %v1367_v26 = vadd.f32 %v1366_v60, %v1278_v9  ;;  %v229_v60 = vld [vmem:[%s3241_s0 + $0x678] sm:$0xff]  ;;  %v223_v61 = vld [vmem:[%s3241_s0 + $0x648] sm:$0xff] }
 0x1e9   :  { %v1280_v31 = vadd.f32 %v1279_v12, %v1191_v5  ;;  %v1434_v43 = vmax.f32 %v1367_v26, 0.0  ;;  %v348_v5 = vpack.c.bf16 %v229_v60, %v222_v37 }
 0x1ee   :  { %v1368_v38 = vpop.f32.mrf.mxu2  ;;  %v1193_v22 = vpop.f32.mrf.mxu0 }
 0x1ef   :  { %v1369_v0 = vadd.f32 %v1368_v38, %v1280_v31  ;;  %v1282_v41 = vpop.f32.mrf.mxu1  ;;  %v1194_v59 = vadd.f32 %v1193_v22, %v2707_v3  ;;  %v230_v3 = vld [vmem:[%s3241_s0 + $0x680] sm:$0xff]  ;;  %v1112_v38 = vadd.f32 %v2765_v48, %v2767_v52  ;;  %v245_v52 = vld [vmem:[%s3241_s0 + $0x6f8] sm:$0xff] }
 0x1f0   :  { %v349_v8 = vpack.c.bf16 %v230_v3, %v223_v61  ;;  %v238_v48 = vld [vmem:[%s3241_s0 + $0x6c0] sm:$0xff] }
 0x1f1   :  { %v1435_v45 = vmax.f32 %v1369_v0, 0.0  ;;  %1232 = vmatmul.bf16.gmra.mxu0 %v341_v39  ;;  %v1283_v57 = vadd.f32 %v1282_v41, %v1194_v59  ;;  %v236_v41 = vld [vmem:[%s3241_s0 + $0x6b0] sm:$0xff] }
 0x1f2   :  { %1321 = vmatmul.bf16.gmra.mxu1 %v342_v32 }
 0x1f3   :  { %v1462_v33 = vpack.c.bf16 %v1435_v45, %v1434_v43  ;;  %1922 = vmatmul.msk.bf16.gmra.mxu2 %vm754_vm0, %v343_v42  ;;  %v243_v43 = vld [vmem:[%s3241_s0 + $0x6e8] sm:$0xff]  ;;  %v237_v45 = vld [vmem:[%s3241_s0 + $0x6b8] sm:$0xff] }
 0x1f4   :  { %v355_v59 = vpack.c.bf16 %v243_v43, %v236_v41 }
 0x1f5   :  { %1570 = vmatmul.bf16.gmra.mxu3 %v1462_v33 }
 0x1f6   :  { %v1371_v54 = vpop.f32.mrf.mxu2  ;;  %v1195_v2 = vpop.f32.mrf.mxu0 }
 0x1f7   :  { %v1284_v23 = vpop.f32.mrf.mxu1  ;;  %v1196_v55 = vadd.f32 %v1195_v2, %v1107_v47  ;;  %v1372_v63 = vadd.f32 %v1371_v54, %v1283_v57  ;;  %v357_v57 = vpack.c.bf16 %v245_v52, %v238_v48  ;;  %v3178_v52 = vpop.f32.mrf.mxu3 }
 0x1f9   :  { %v1285_v4 = vadd.f32 %v1284_v23, %v1196_v55  ;;  %v1436_v46 = vmax.f32 %v1372_v63, 0.0 }
 0x1fe   :  { %v1373_v12 = vpop.f32.mrf.mxu2  ;;  %v1198_v14 = vpop.f32.mrf.mxu0 }
 0x1ff   :  { %v1374_v9 = vadd.f32 %v1373_v12, %v1285_v4  ;;  %v1287_v21 = vpop.f32.mrf.mxu1  ;;  %v1199_v39 = vadd.f32 %v1198_v14, %v2739_v35  ;;  %v244_v35 = vld [vmem:[%s3241_s0 + $0x6f0] sm:$0xff] }
 0x200   :  { %v356_v2 = vpack.c.bf16 %v244_v35, %v237_v45 }
 0x201   :  { %v1437_v49 = vmax.f32 %v1374_v9, 0.0  ;;  %1237 = vmatmul.bf16.gmra.mxu0 %v348_v5  ;;  %v1288_v42 = vadd.f32 %v1287_v21, %v1199_v39 }
 0x202   :  { %1326 = vmatmul.bf16.gmra.mxu1 %v349_v8 }
 0x203   :  { %v1463_v26 = vpack.c.bf16 %v1437_v49, %v1436_v46  ;;  %1923 = vmatmul.msk.bf16.gmra.mxu2 %vm754_vm0, %v350_v34 }
 0x205   :  { %1575 = vmatmul.bf16.gmra.mxu3 %v1463_v26 }
 0x206   :  { %v1376_v31 = vpop.f32.mrf.mxu2  ;;  %v1200_v32 = vpop.f32.mrf.mxu0 }
 0x207   :  { %v1289_v0 = vpop.f32.mrf.mxu1  ;;  %v1201_v22 = vadd.f32 %v1200_v32, %v1112_v38  ;;  %v1377_v33 = vadd.f32 %v1376_v31, %v1288_v42 }
 0x209   :  { %v1290_v54 = vadd.f32 %v1289_v0, %v1201_v22  ;;  %v1438_v60 = vmax.f32 %v1377_v33, 0.0 }
 0x20e   :  { %v1378_v47 = vpop.f32.mrf.mxu2  ;;  %v1203_v55 = vpop.f32.mrf.mxu0 }
 0x20f   :  { %v1379_v23 = vadd.f32 %v1378_v47, %v1290_v54  ;;  %v1292_v37 = vpop.f32.mrf.mxu1  ;;  %v1204_v63 = vadd.f32 %v1203_v55, %v2774_v7 }
 0x211   :  { %v1439_v61 = vmax.f32 %v1379_v23, 0.0  ;;  %1242 = vmatmul.bf16.gmra.mxu0 %v355_v59  ;;  %v1293_v8 = vadd.f32 %v1292_v37, %v1204_v63 }
 0x212   :  { %1331 = vmatmul.bf16.gmra.mxu1 %v356_v2 }
 0x213   :  { %v1464_v3 = vpack.c.bf16 %v1439_v61, %v1438_v60  ;;  %1924 = vmatmul.msk.bf16.gmra.mxu2 %vm754_vm0, %v357_v57  ;;  %v3186_v61 = vld [vmem:[%s3245_s4] ss:$0 sm:$0xff]  ;;  %s2140_s4 = smov [#allocation2]  }
 0x214   :  { %s1699_s6 = sshll.u32 %s2140_s4, 4  ;;  %s1700_s6 = int_to_ptr.vmem [resolvable:$true] %s1699_s6 }
 0x215   :  { %1580 = vmatmul.bf16.gmra.mxu3 %v1464_v3 }
 0x216   :  { %v1381_v15 = vpop.f32.mrf.mxu2  ;;  %v1205_v4 = vpop.f32.mrf.mxu0 }
 0x217   :  { %v1294_v12 = vpop.f32.mrf.mxu1  ;;  %v1206_v5 = vadd.f32 %v1205_v4, %v1117_v18  ;;  %v1382_v9 = vadd.f32 %v1381_v15, %v1293_v8 }
 0x219   :  { %v1295_v14 = vadd.f32 %v1294_v12, %v1206_v5  ;;  %v1440_v26 = vmax.f32 %v1382_v9, 0.0 }
 0x21e   :  { %v1383_v21 = vpop.f32.mrf.mxu2  ;;  %v1208_v46 = vpop.f32.mrf.mxu0 }
 0x21f   :  { %v1384_v34 = vadd.f32 %v1383_v21, %v1295_v14  ;;  %v1297_v49 = vpop.f32.mrf.mxu1  ;;  %v1209_v7 = vadd.f32 %v1208_v46, %v2801_v40  ;;  %v1127_v40 = vadd.f32 %v2851_v27, %v2853_v30  ;;  %v1132_v14 = vadd.f32 %v2878_v1, %v2880_v6 }
 0x221   :  { %v1441_v31 = vmax.f32 %v1384_v34, 0.0  ;;  %v1298_v22 = vadd.f32 %v1297_v49, %v1209_v7 }
 0x223   :  { %v1465_v38 = vpack.c.bf16 %v1441_v31, %v1440_v26 }
 0x225   :  { %1585 = vmatmul.bf16.gmra.mxu3 %v1465_v38 }
 0x226   :  { %v1386_v39 = vpop.f32.mrf.mxu2  ;;  %v1210_v24 = vpop.f32.mrf.mxu0 }
 0x227   :  { %v1299_v32 = vpop.f32.mrf.mxu1  ;;  %v1211_v0 = vadd.f32 %v1210_v24, %v1122_v19  ;;  %v1387_v41 = vadd.f32 %v1386_v39, %v1298_v22 }
 0x229   :  { %v1300_v42 = vadd.f32 %v1299_v32, %v1211_v0  ;;  %v1442_v33 = vmax.f32 %v1387_v41, 0.0 }
 0x22e   :  { %v1388_v43 = vpop.f32.mrf.mxu2  ;;  %v1213_v35 = vpop.f32.mrf.mxu0 }
 0x22f   :  { %v1389_v45 = vadd.f32 %v1388_v43, %v1300_v42  ;;  %v1302_v48 = vpop.f32.mrf.mxu1  ;;  %v1214_v53 = vadd.f32 %v1213_v35, %v2831_v11 }
 0x231   :  { %v1443_v54 = vmax.f32 %v1389_v45, 0.0  ;;  %v1303_v37 = vadd.f32 %v1302_v48, %v1214_v53  ;;  %v1137_v45 = vadd.f32 %v2908_v44, %v2910_v51 }
 0x233   :  { %v1466_v47 = vpack.c.bf16 %v1443_v54, %v1442_v33 }
 0x235   :  { %1590 = vmatmul.bf16.gmra.mxu3 %v1466_v47 }
 0x236   :  { %v1391_v59 = vpop.f32.mrf.mxu2  ;;  %v1215_v58 = vpop.f32.mrf.mxu0 }
 0x237   :  { %v1304_v2 = vpop.f32.mrf.mxu1  ;;  %v1216_v55 = vadd.f32 %v1215_v58, %v1127_v40  ;;  %v1392_v57 = vadd.f32 %v1391_v59, %v1303_v37 }
 0x238   :  { %v1551_v23 = vpop.f32.mrf.mxu3 }
 0x239   :  { %v1305_v60 = vadd.f32 %v1304_v2, %v1216_v55  ;;  %v1444_v27 = vmax.f32 %v1392_v57, 0.0  ;;  %v1552_v11 = vadd.f32 %v3186_v61, %v1551_v23 }
 0x23e   :  { %v1393_v3 = vpop.f32.mrf.mxu2  ;;  %v1218_v18 = vpop.f32.mrf.mxu0 }
 0x23f   :  { %v1394_v15 = vadd.f32 %v1393_v3, %v1305_v60  ;;  %v1307_v63 = vpop.f32.mrf.mxu1  ;;  %v1219_v21 = vadd.f32 %v1218_v18, %v2858_v50  ;;  %v1142_v18 = vadd.f32 %v2935_v28, %v2937_v36 }
 0x240   :  { %v1553_v4 = vpop.f32.mrf.mxu3 }
 0x241   :  { %v1445_v30 = vmax.f32 %v1394_v15, 0.0  ;;  %v1554_v12 = vadd.f32 %v3186_v61, %v1553_v4  ;;  %v1308_v31 = vadd.f32 %v1307_v63, %v1219_v21 }
 0x243   :  { %v1467_v5 = vpack.c.bf16 %v1445_v30, %v1444_v27  ;;  %v2017_v8 = vpack.c.bf16 %v1554_v12, %v1552_v11 }
 0x245   :  { %2018 = vst [vmem:[#allocation2] sm:$0xff] %v2017_v8   ;;  %1595 = vmatmul.bf16.gmra.mxu3 %v1467_v5 }
 0x246   :  { %v1396_v9 = vpop.f32.mrf.mxu2  ;;  %v1220_v34 = vpop.f32.mrf.mxu0 }
 0x247   :  { %v1309_v46 = vpop.f32.mrf.mxu1  ;;  %v1221_v26 = vadd.f32 %v1220_v34, %v1132_v14  ;;  %v1397_v38 = vadd.f32 %v1396_v9, %v1308_v31 }
 0x248   :  { %v1556_v49 = vpop.f32.mrf.mxu3 }
 0x249   :  { %v1310_v39 = vadd.f32 %v1309_v46, %v1221_v26  ;;  %v1446_v22 = vmax.f32 %v1397_v38, 0.0  ;;  %v1557_v41 = vadd.f32 %v3186_v61, %v1556_v49 }
 0x24e   :  { %v1398_v19 = vpop.f32.mrf.mxu2  ;;  %v1223_v24 = vpop.f32.mrf.mxu0 }
 0x24f   :  { %v1399_v7 = vadd.f32 %v1398_v19, %v1310_v39  ;;  %v1312_v32 = vpop.f32.mrf.mxu1  ;;  %v1224_v35 = vadd.f32 %v1223_v24, %v2888_v29  ;;  %v1147_v39 = vadd.f32 %v2965_v17, %v2967_v25 }
 0x250   :  { %v1558_v0 = vpop.f32.mrf.mxu3 }
 0x251   :  { %v1447_v42 = vmax.f32 %v1399_v7, 0.0  ;;  %v1559_v1 = vadd.f32 %v3186_v61, %v1558_v0  ;;  %v1313_v59 = vadd.f32 %v1312_v32, %v1224_v35 }
 0x253   :  { %v1468_v6 = vpack.c.bf16 %v1447_v42, %v1446_v22  ;;  %v2022_v50 = vpack.c.bf16 %v1559_v1, %v1557_v41 }
 0x255   :  { %2094 = vst [vmem:[#allocation2 + $0x8] sm:$0xff] %v2022_v50   ;;  %1600 = vmatmul.bf16.gmra.mxu3 %v1468_v6 }
 0x256   :  { %v1401_v43 = vpop.f32.mrf.mxu2  ;;  %v1225_v48 = vpop.f32.mrf.mxu0 }
 0x257   :  { %v1314_v33 = vpop.f32.mrf.mxu1  ;;  %v1226_v47 = vadd.f32 %v1225_v48, %v1137_v45  ;;  %v1402_v40 = vadd.f32 %v1401_v43, %v1313_v59 }
 0x258   :  { %v1561_v54 = vpop.f32.mrf.mxu3 }
 0x259   :  { %v1315_v53 = vadd.f32 %v1314_v33, %v1226_v47  ;;  %v1448_v57 = vmax.f32 %v1402_v40, 0.0  ;;  %v1562_v60 = vadd.f32 %v3186_v61, %v1561_v54  ;;  %v1152_v47 = vadd.f32 %v2992_v13, %v2994_v20 }
 0x25e   :  { %v1403_v58 = vpop.f32.mrf.mxu2  ;;  %v1228_v23 = vpop.f32.mrf.mxu0 }
 0x25f   :  { %v1404_v2 = vadd.f32 %v1403_v58, %v1315_v53  ;;  %v1317_v55 = vpop.f32.mrf.mxu1  ;;  %v1229_v63 = vadd.f32 %v1228_v23, %v2915_v10 }
 0x260   :  { %v1563_v37 = vpop.f32.mrf.mxu3 }
 0x261   :  { %v1449_v3 = vmax.f32 %v1404_v2, 0.0  ;;  %v1564_v44 = vadd.f32 %v3186_v61, %v1563_v37  ;;  %v1318_v12 = vadd.f32 %v1317_v55, %v1229_v63 }
 0x263   :  { %v1469_v51 = vpack.c.bf16 %v1449_v3, %v1448_v57  ;;  %v2027_v29 = vpack.c.bf16 %v1564_v44, %v1562_v60 }
 0x265   :  { %2095 = vst [vmem:[#allocation2 + $0x10] sm:$0xff] %v2027_v29   ;;  %1605 = vmatmul.bf16.gmra.mxu3 %v1469_v51 }
 0x266   :  { %v1406_v15 = vpop.f32.mrf.mxu2  ;;  %v1230_v4 = vpop.f32.mrf.mxu0 }
 0x267   :  { %v1319_v27 = vpop.f32.mrf.mxu1  ;;  %v1231_v30 = vadd.f32 %v1230_v4, %v1142_v18  ;;  %v1407_v5 = vadd.f32 %v1406_v15, %v1318_v12  ;;  %v1157_v4 = vadd.f32 %v3178_v52, %v3019_v16 }
 0x268   :  { %v1566_v11 = vpop.f32.mrf.mxu3 }
 0x269   :  { %v1320_v8 = vadd.f32 %v1319_v27, %v1231_v30  ;;  %v1450_v49 = vmax.f32 %v1407_v5, 0.0  ;;  %v1567_v26 = vadd.f32 %v3186_v61, %v1566_v11  ;;  %v3248_v27 = vld [vmem:[#allocation5_spill] sm:$0xff] }
 0x26e   :  { %v1408_v9 = vpop.f32.mrf.mxu2  ;;  %v1233_v21 = vpop.f32.mrf.mxu0 }
 0x26f   :  { %v1409_v14 = vadd.f32 %v1408_v9, %v1320_v8  ;;  %v1322_v34 = vpop.f32.mrf.mxu1  ;;  %v1234_v19 = vadd.f32 %v1233_v21, %v2945_v62 }
 0x270   :  { %v1568_v46 = vpop.f32.mrf.mxu3 }
 0x271   :  { %v1451_v31 = vmax.f32 %v1409_v14, 0.0  ;;  %v1569_v28 = vadd.f32 %v3186_v61, %v1568_v46  ;;  %v1323_v22 = vadd.f32 %v1322_v34, %v1234_v19 }
 0x273   :  { %v1470_v36 = vpack.c.bf16 %v1451_v31, %v1450_v49  ;;  %v2032_v10 = vpack.c.bf16 %v1569_v28, %v1567_v26 }
 0x275   :  { %2096 = vst [vmem:[#allocation2 + $0x18] sm:$0xff] %v2032_v10   ;;  %1610 = vmatmul.bf16.gmra.mxu3 %v1470_v36 }
 0x276   :  { %v1411_v38 = vpop.f32.mrf.mxu2  ;;  %v1235_v7 = vpop.f32.mrf.mxu0 }
 0x277   :  { %v1324_v24 = vpop.f32.mrf.mxu1  ;;  %v1236_v0 = vadd.f32 %v1235_v7, %v1147_v39  ;;  %v1412_v41 = vadd.f32 %v1411_v38, %v1323_v22 }
 0x278   :  { %v1571_v32 = vpop.f32.mrf.mxu3 }
 0x279   :  { %v1325_v42 = vadd.f32 %v1324_v24, %v1236_v0  ;;  %v1452_v35 = vmax.f32 %v1412_v41, 0.0  ;;  %v1572_v48 = vadd.f32 %v3186_v61, %v1571_v32 }
 0x27e   :  { %v1413_v1 = vpop.f32.mrf.mxu2  ;;  %v1238_v50 = vpop.f32.mrf.mxu0 }
 0x27f   :  { %v1414_v6 = vadd.f32 %v1413_v1, %v1325_v42  ;;  %v1327_v43 = vpop.f32.mrf.mxu1  ;;  %v1239_v59 = vadd.f32 %v1238_v50, %v2972_v56 }
 0x280   :  { %v1573_v45 = vpop.f32.mrf.mxu3 }
 0x281   :  { %v1453_v33 = vmax.f32 %v1414_v6, 0.0  ;;  %v1574_v17 = vadd.f32 %v3186_v61, %v1573_v45  ;;  %v1328_v23 = vadd.f32 %v1327_v43, %v1239_v59 }
 0x283   :  { %v1471_v25 = vpack.c.bf16 %v1453_v33, %v1452_v35  ;;  %v2037_v62 = vpack.c.bf16 %v1574_v17, %v1572_v48 }
 0x285   :  { %2097 = vst [vmem:[#allocation2 + $0x20] sm:$0xff] %v2037_v62   ;;  %1615 = vmatmul.bf16.gmra.mxu3 %v1471_v25 }
 0x286   :  { %v1416_v54 = vpop.f32.mrf.mxu2  ;;  %v1240_v40 = vpop.f32.mrf.mxu0 }
 0x287   :  { %v1329_v53 = vpop.f32.mrf.mxu1  ;;  %v1241_v2 = vadd.f32 %v1240_v40, %v1152_v47  ;;  %v1417_v55 = vadd.f32 %v1416_v54, %v1328_v23 }
 0x288   :  { %v1576_v58 = vpop.f32.mrf.mxu3 }
 0x289   :  { %v1330_v37 = vadd.f32 %v1329_v53, %v1241_v2  ;;  %v1454_v51 = vmax.f32 %v1417_v55, 0.0  ;;  %v1577_v29 = vadd.f32 %v3186_v61, %v1576_v58 }
 0x28e   :  { %v1418_v57 = vpop.f32.mrf.mxu2  ;;  %v1243_v3 = vpop.f32.mrf.mxu0 }
 0x28f   :  { %v1419_v60 = vadd.f32 %v1418_v57, %v1330_v37  ;;  %v1332_v13 = vpop.f32.mrf.mxu1  ;;  %v1244_v11 = vadd.f32 %v1243_v3, %v3248_v27 }
 0x290   :  { %v1578_v44 = vpop.f32.mrf.mxu3 }
 0x291   :  { %v1455_v15 = vmax.f32 %v1419_v60, 0.0  ;;  %v1579_v18 = vadd.f32 %v3186_v61, %v1578_v44  ;;  %v1333_v8 = vadd.f32 %v1332_v13, %v1244_v11 }
 0x293   :  { %v1472_v20 = vpack.c.bf16 %v1455_v15, %v1454_v51  ;;  %v2042_v56 = vpack.c.bf16 %v1579_v18, %v1577_v29 }
 0x295   :  { %2098 = vst [vmem:[#allocation2 + $0x28] sm:$0xff] %v2042_v56   ;;  %1620 = vmatmul.bf16.gmra.mxu3 %v1472_v20 }
 0x296   :  { %v1421_v63 = vpop.f32.mrf.mxu2  ;;  %v1245_v30 = vpop.f32.mrf.mxu0 }
 0x297   :  { %v1246_v5 = vadd.f32 %v1245_v30, %v1157_v4  ;;  %v1334_v9 = vpop.f32.mrf.mxu1  ;;  %v1422_v14 = vadd.f32 %v1421_v63, %v1333_v8 }
 0x298   :  { %v1581_v12 = vpop.f32.mrf.mxu3 }
 0x299   :  { %v1335_v21 = vadd.f32 %v1334_v9, %v1246_v5  ;;  %v1456_v26 = vmax.f32 %v1422_v14, 0.0  ;;  %v1582_v31 = vadd.f32 %v3186_v61, %v1581_v12 }
 0x29e   :  { %v1423_v34 = vpop.f32.mrf.mxu2 }
 0x29f   :  { %v1424_v46 = vadd.f32 %v1423_v34, %v1335_v21 }
 0x2a0   :  { %v1583_v49 = vpop.f32.mrf.mxu3 }
 0x2a1   :  { %v1457_v28 = vmax.f32 %v1424_v46, 0.0  ;;  %v1584_v36 = vadd.f32 %v3186_v61, %v1583_v49 }
 0x2a3   :  { %v1473_v10 = vpack.c.bf16 %v1457_v28, %v1456_v26  ;;  %v2047_v16 = vpack.c.bf16 %v1584_v36, %v1582_v31 }
 0x2a5   :  { %2099 = vst [vmem:[#allocation2 + $0x30] sm:$0xff] %v2047_v16   ;;  %1625 = vmatmul.bf16.gmra.mxu3 %v1473_v10 }
 0x2a8   :  { %v1586_v52 = vpop.f32.mrf.mxu3 }
 0x2a9   :  { %v1587_v39 = vadd.f32 %v3186_v61, %v1586_v52 }
 0x2b0   :  { %v1588_v38 = vpop.f32.mrf.mxu3 }
 0x2b1   :  { %v1589_v19 = vadd.f32 %v3186_v61, %v1588_v38 }
 0x2b3   :  { %v2052_v7 = vpack.c.bf16 %v1589_v19, %v1587_v39 }
 0x2b5   :  { %2100 = vst [vmem:[#allocation2 + $0x38] sm:$0xff] %v2052_v7  }
 0x2b8   :  { %v1591_v24 = vpop.f32.mrf.mxu3 }
 0x2b9   :  { %v1592_v0 = vadd.f32 %v3186_v61, %v1591_v24 }
 0x2c0   :  { %v1593_v32 = vpop.f32.mrf.mxu3 }
 0x2c1   :  { %v1594_v22 = vadd.f32 %v3186_v61, %v1593_v32 }
 0x2c3   :  { %v2057_v41 = vpack.c.bf16 %v1594_v22, %v1592_v0 }
 0x2c5   :  { %2101 = vst [vmem:[#allocation2 + $0x40] sm:$0xff] %v2057_v41  }
 0x2c8   :  { %v1596_v42 = vpop.f32.mrf.mxu3 }
 0x2c9   :  { %v1597_v6 = vadd.f32 %v3186_v61, %v1596_v42 }
 0x2d0   :  { %v1598_v1 = vpop.f32.mrf.mxu3 }
 0x2d1   :  { %v1599_v50 = vadd.f32 %v3186_v61, %v1598_v1 }
 0x2d3   :  { %v2062_v43 = vpack.c.bf16 %v1599_v50, %v1597_v6 }
 0x2d5   :  { %2102 = vst [vmem:[#allocation2 + $0x48] sm:$0xff] %v2062_v43  }
 0x2d8   :  { %v1601_v45 = vpop.f32.mrf.mxu3 }
 0x2d9   :  { %v1602_v48 = vadd.f32 %v3186_v61, %v1601_v45 }
 0x2e0   :  { %v1603_v35 = vpop.f32.mrf.mxu3 }
 0x2e1   :  { %v1604_v33 = vadd.f32 %v3186_v61, %v1603_v35 }
 0x2e3   :  { %v2067_v17 = vpack.c.bf16 %v1604_v33, %v1602_v48 }
 0x2e5   :  { %2103 = vst [vmem:[#allocation2 + $0x50] sm:$0xff] %v2067_v17  }
 0x2e8   :  { %v1606_v25 = vpop.f32.mrf.mxu3 }
 0x2e9   :  { %v1607_v54 = vadd.f32 %v3186_v61, %v1606_v25 }
 0x2f0   :  { %v1608_v62 = vpop.f32.mrf.mxu3 }
 0x2f1   :  { %v1609_v47 = vadd.f32 %v3186_v61, %v1608_v62 }
 0x2f3   :  { %v2072_v59 = vpack.c.bf16 %v1609_v47, %v1607_v54 }
 0x2f5   :  { %2104 = vst [vmem:[#allocation2 + $0x58] sm:$0xff] %v2072_v59  }
 0x2f8   :  { %v1611_v40 = vpop.f32.mrf.mxu3 }
 0x2f9   :  { %v1612_v58 = vadd.f32 %v3186_v61, %v1611_v40 }
 0x300   :  { %v1613_v53 = vpop.f32.mrf.mxu3 }
 0x301   :  { %v1614_v2 = vadd.f32 %v3186_v61, %v1613_v53 }
 0x303   :  { %v2077_v23 = vpack.c.bf16 %v1614_v2, %v1612_v58 }
 0x305   :  { %2105 = vst [vmem:[#allocation2 + $0x60] sm:$0xff] %v2077_v23  }
 0x308   :  { %v1616_v55 = vpop.f32.mrf.mxu3 }
 0x309   :  { %v1617_v57 = vadd.f32 %v3186_v61, %v1616_v55 }
 0x310   :  { %v1618_v37 = vpop.f32.mrf.mxu3 }
 0x311   :  { %v1619_v60 = vadd.f32 %v3186_v61, %v1618_v37 }
 0x313   :  { %v2082_v3 = vpack.c.bf16 %v1619_v60, %v1617_v57 }
 0x315   :  { %2106 = vst [vmem:[#allocation2 + $0x68] sm:$0xff] %v2082_v3  }
 0x318   :  { %v1621_v44 = vpop.f32.mrf.mxu3 }
 0x319   :  { %v1622_v29 = vadd.f32 %v3186_v61, %v1621_v44 }
 0x320   :  { %v1623_v51 = vpop.f32.mrf.mxu3 }
 0x321   :  { %v1624_v15 = vadd.f32 %v3186_v61, %v1623_v51 }
 0x323   :  { %v2087_v18 = vpack.c.bf16 %v1624_v15, %v1622_v29 }
 0x325   :  { %2107 = vst [vmem:[#allocation2 + $0x70] sm:$0xff] %v2087_v18  }
 0x328   :  { %v1626_v13 = vpop.f32.mrf.mxu3 }
 0x329   :  { %v1627_v56 = vadd.f32 %v3186_v61, %v1626_v13 }
 0x330   :  { %v1628_v20 = vpop.f32.mrf.mxu3 }
 0x331   :  { %v1629_v63 = vadd.f32 %v3186_v61, %v1628_v20 }
 0x333   :  { %v2092_v4 = vpack.c.bf16 %v1629_v63, %v1627_v56 }
 0x335   :  { %2108 = vst [vmem:[#allocation2 + $0x78] sm:$0xff] %v2092_v4  }
 0x336   :  { %1707 = dma.vmem_to_hbm [thread:$0]  %s1700_s6, 2048, %s1702_s9, [#allocation3], %s2141_s1, %s2141_s1, %s2142_s10  }
 0x337   :  { %2138 = dma.done.wait [#allocation3], 2048  }
 0x338   :  { %2139 = vsyncadd [#allocation3], 4294965248 }
 0x339   :  { %1712 = vsyncpa [#allocation3], 1 }

</bundles_post_ra>
